<compile_context>
chip_gen: v5e
topology: v5e:2x2
jax: 0.10.0
libtpu: 0.0.40
codegen_flags: <defaults>
</compile_context>

<pallas_src>
import numpy as np
import jax
import jax.numpy as jnp
from jax import lax
from jax.experimental import pallas as pl
from jax.experimental.pallas import tpu as pltpu


# ----------------------------------------------------------------------------
# Deterministic filter banks (reproduce the torch module __init__)
# ----------------------------------------------------------------------------
def gaussian_kernel(k=3, mu=0.0, sigma=1.0, normalize=True):
    g1 = np.linspace(-1, 1, k)
    x, y = np.meshgrid(g1, g1)
    d = (x ** 2 + y ** 2) ** 0.5
    g2 = np.exp(-(d - mu) ** 2 / (2 * sigma ** 2))
    g2 = g2 / (2 * np.pi * sigma ** 2)
    if normalize:
        g2 = g2 / np.sum(g2)
    return g2


def sobel_kernel(k=3):
    r = np.linspace(-(k // 2), k // 2, k)
    x, y = np.meshgrid(r, r)
    num = x
    den = x ** 2 + y ** 2
    den[:, k // 2] = 1
    return num / den


_GAUSS = gaussian_kernel()                       # reference 3x3 (used by the numpy check)
_SOBEL_X = sobel_kernel()                        # [[-0.5,0,0.5],[-1,0,1],[-0.5,0,0.5]]
# Separable factors of the (mu=0, sigma=1) Gaussian: GAUSS == outer(g1d, g1d) exactly.
_G1D = np.exp(-np.linspace(-1, 1, 3) ** 2 / 2.0)
_G1D = _G1D / np.sum(_G1D)
_GA = float(_G1D[0])                             # outer tap
_GB = float(_G1D[1])                             # centre tap

_HALO = 8                   # sublane-aligned recompute halo; stencil-chain radius is 3
_USE_APPROX_RECIP = True    # EUP vrcp for atan range reduction; set False for bit-parity


def _round_up(x, m):
    return ((x + m - 1) // m) * m


def _recip(x):
    if _USE_APPROX_RECIP:
        return pl.reciprocal(x, approx=True)
    return 1.0 / x


def _atan(z):
    """float32 arctan via Cephes-style range reduction (matches torch.atan to ~1 ulp)."""
    ax = jnp.abs(z)
    big = ax > 2.414213562373095
    med = ax > 0.4142135623730951
    y0 = jnp.where(big, np.float32(np.pi / 2),
                   jnp.where(med, np.float32(np.pi / 4), np.float32(0.0)))
    inv_big = -_recip(ax)                       # branch for |z| > tan(3*pi/8)
    inv_med = (ax - 1.0) * _recip(ax + 1.0)     # branch for |z| > tan(pi/8)
    xr = jnp.where(big, inv_big, jnp.where(med, inv_med, ax))
    z2 = xr * xr
    p = ((((8.05374449538e-2 * z2 - 1.38776856032e-1) * z2
           + 1.99777106478e-1) * z2 - 3.33329491539e-1) * z2) * xr + xr
    r = y0 + p
    return jnp.where(z < 0, -r, r)


# ----------------------------------------------------------------------------
# Kernel
# ----------------------------------------------------------------------------
def _make_canny_kernel(C, H, W, Hp, Wp, TH):
    HW = TH + 2 * _HALO
    inv_c = np.float32(1.0 / C)
    ga = np.float32(_GA)
    gb = np.float32(_GB)
    mask_cols = (Wp == W)   # no zero pad columns -> must mask the circular wrap of col rolls

    # Row rolls never need wrap masking: the 8-row halo on each side of the work buffer
    # absorbs the (radius-3) wrap contamination before it reaches the stored rows.
    def _up(x):             # x[r-1, c]
        return pltpu.roll(x, 1, 0)

    def _dn(x):             # x[r+1, c]
        return pltpu.roll(x, x.shape[0] - 1, 0)

    def _lf(x):             # x[r, c-1]  (zero at the image's left edge)
        y = pltpu.roll(x, 1, 1)
        if mask_cols:
            col = lax.broadcasted_iota(jnp.int32, x.shape, 1)
            y = jnp.where(col == 0, 0.0, y)
        return y

    def _rt(x):             # x[r, c+1]  (zero at the image's right edge)
        y = pltpu.roll(x, x.shape[1] - 1, 1)
        if mask_cols:
            col = lax.broadcasted_iota(jnp.int32, x.shape, 1)
            y = jnp.where(col == x.shape[1] - 1, 0.0, y)
        return y

    def _zero_outside_image(x, h):
        # Emulate Conv2d(padding=1) zero padding: zero everything outside [0,H) x [0,W).
        # Recomputed (cheap iota) at each of its two uses instead of kept live.
        grow = lax.broadcasted_iota(jnp.int32, x.shape, 0) + (h * TH - _HALO)
        m = jnp.logical_and(grow >= 0, grow < H)
        if Wp > W:
            m = jnp.logical_and(m, lax.broadcasted_iota(jnp.int32, x.shape, 1) < W)
        return jnp.where(m, x, 0.0)

    def kernel(img_c_ref, img_t_ref, img_b_ref,
               blur_ref, gx_ref, gy_ref, mag_ref, ori_ref, thin_ref,
               xs_ref):
        h = pl.program_id(1)
        nh = pl.num_programs(1)
        top_f = jnp.where(h > 0, np.float32(1.0), np.float32(0.0))       # real top halo?
        bot_f = jnp.where(h < nh - 1, np.float32(1.0), np.float32(0.0))  # real bottom halo?
        mid = slice(_HALO, _HALO + TH)

        # ---- Gaussian blur per channel (separable 3-tap passes), channel-summed ----
        # TODO(synk): for very large C move this unrolled loop to an 'arbitrary' grid axis
        # with a VMEM bsum accumulator (bounds live ranges / VMEM per step).
        bsum = jnp.zeros((HW, Wp), jnp.float32)
        for c in range(C):
            xs_ref[pl.ds(0, _HALO), :] = img_t_ref[0, c] * top_f
            xs_ref[pl.ds(_HALO, TH), :] = img_c_ref[0, c]
            xs_ref[pl.ds(_HALO + TH, _HALO), :] = img_b_ref[0, c] * bot_f
            xc = xs_ref[...]
            v = gb * xc + ga * (_up(xc) + _dn(xc))        # vertical [a, b, a]
            bc = gb * v + ga * (_lf(v) + _rt(v))          # horizontal [a, b, a]
            blur_ref[0, c] = bc[mid]
            bsum = bsum + bc

        # ---- Sobel on the channel-summed blur (linearity), separable factoring ----
        bsum = _zero_outside_image(bsum, h)               # restore zero padding halo
        up_b = _up(bsum)
        dn_b = _dn(bsum)
        sv = bsum + 0.5 * (up_b + dn_b)                   # [0.5, 1, 0.5] vertical smoothing
        gx = (_rt(sv) - _lf(sv)) * inv_c                  # [-1, 0, 1] horizontal difference
        dv = dn_b - up_b                                  # [-1, 0, 1]^T vertical difference
        gy = (dv + 0.5 * (_rt(dv) + _lf(dv))) * inv_c     # [0.5, 1, 0.5] horizontal smoothing
        gxc = gx[mid]
        gyc = gy[mid]
        gx_ref[0, 0] = gxc
        gy_ref[0, 0] = gyc

        # ---- magnitude & 45-degree-quantized orientation (central rows only) ----
        mag = jnp.sqrt(gx * gx + gy * gy)
        mag_ref[0, 0] = mag[mid]

        raw = _atan(gyc / gxc) * np.float32(360.0 / np.pi) + 180.0   # exact div: 0/0 -> NaN
        q = jnp.round(raw * np.float32(1.0 / 45.0))                  # round-half-even (torch)
        ori_ref[0, 0] = q * 45.0
        pidx = jnp.where(q == 8.0, 0.0, q)                           # == (ori / 45) % 8

        # ---- non-max suppression: direct neighbor comparisons (no 8 conv planes) ----
        magm = _zero_outside_image(mag, h)                # zero padding for neighbor reads
        up_m, dn_m = _up(magm), _dn(magm)
        lf_m, rt_m = _lf(magm), _rt(magm)
        ul_m, ur_m = _lf(up_m), _rt(up_m)
        dl_m, dr_m = _lf(dn_m), _rt(dn_m)
        mc = magm[mid]
        # directional pair i: opposite neighbors along i*45 deg (0, 45, 90, 135)
        pairs = ((rt_m, lf_m), (ur_m, dl_m), (up_m, dn_m), (ul_m, dr_m))
        thin = mc
        for i, (p_nb, n_nb) in enumerate(pairs):
            is_oriented = jnp.logical_or(pidx == np.float32(i), pidx == np.float32(i + 4))
            is_max = jnp.logical_and(mc > p_nb[mid], mc > n_nb[mid])
            to_remove = jnp.logical_and(is_oriented, jnp.logical_not(is_max))
            thin = jnp.where(to_remove, 0.0, thin)
        thin_ref[0, 0] = thin
        # TODO(synk): the optional low/high-threshold + hysteresis-conv branch is dead with
        # the default forward(img) arguments and is not implemented.

    return kernel


# ----------------------------------------------------------------------------
# Wrapper
# ----------------------------------------------------------------------------
def _pick_tile_rows(B, Hp, Wp, C, vmem_cap):
    """Largest 8-multiple row tile that divides Hp, fits the VMEM budget, keeps >=2 grid pts."""
    def est(th):
        plane_row = Wp * 4
        io = 2 * (C * th + 2 * C * _HALO + (C + 5) * th) * plane_row   # double-buffered blocks
        scratch = (th + 2 * _HALO) * plane_row
        temps = 20 * (th + 2 * _HALO) * plane_row                      # live-value headroom
        return io + scratch + temps

    candidates = [t for t in range(_HALO, Hp + 1, _HALO) if Hp % t == 0 and t <= 512]
    fitting = [t for t in candidates if est(t) <= 0.7 * vmem_cap] or [candidates[0]]
    th = max(fitting)
    if B * (Hp // th) < 2:                       # keep both v7x TensorCores busy at B=1
        smaller = [t for t in fitting if Hp // t >= 2]
        if smaller:
            th = max(smaller)
    return th, est(th)


@jax.jit
def canny_filter(img):
    B, C, H, W = img.shape
    img = img.astype(jnp.float32)

    # Tight lane/sublane padding (no "+1 slack"); skipped entirely when already aligned.
    Hp = _round_up(H, 8)
    Wp = _round_up(W, 128)
    if (Hp, Wp) != (H, W):
        img_p = jnp.pad(img, ((0, 0), (0, 0), (0, Hp - H), (0, Wp - W)))
    else:
        img_p = img

    try:
        vmem_cap = int(pltpu.get_tpu_info().vmem_capacity_bytes)
    except Exception:
        vmem_cap = 64 * 1024 * 1024              # conservative (v7x per-TC VMEM)
    TH, est = _pick_tile_rows(B, Hp, Wp, C, vmem_cap)
    NH = Hp // TH
    HB = TH // _HALO                              # halo-block index stride (8-row blocks)

    kernel = _make_canny_kernel(C, H, W, Hp, Wp, TH)

    out_shape = (
        jax.ShapeDtypeStruct((B, C, Hp, Wp), jnp.float32),   # blurred
        jax.ShapeDtypeStruct((B, 1, Hp, Wp), jnp.float32),   # grad_x
        jax.ShapeDtypeStruct((B, 1, Hp, Wp), jnp.float32),   # grad_y
        jax.ShapeDtypeStruct((B, 1, Hp, Wp), jnp.float32),   # grad_magnitude
        jax.ShapeDtypeStruct((B, 1, Hp, Wp), jnp.float32),   # grad_orientation
        jax.ShapeDtypeStruct((B, 1, Hp, Wp), jnp.float32),   # thin_edges
    )

    centre_in = pl.BlockSpec((1, C, TH, Wp), lambda b, h: (b, 0, h, 0))
    top_halo = pl.BlockSpec((1, C, _HALO, Wp),
                            lambda b, h: (b, 0, jnp.maximum(h * HB - 1, 0), 0))
    bot_halo = pl.BlockSpec((1, C, _HALO, Wp),
                            lambda b, h: (b, 0, jnp.minimum((h + 1) * HB, Hp // _HALO - 1), 0))
    c_out = pl.BlockSpec((1, C, TH, Wp), lambda b, h: (b, 0, h, 0))
    one_out = pl.BlockSpec((1, 1, TH, Wp), lambda b, h: (b, 0, h, 0))

    grid_spec = pltpu.PrefetchScalarGridSpec(
        num_scalar_prefetch=0,
        grid=(B, NH),
        in_specs=[centre_in, top_halo, bot_halo],
        out_specs=[c_out, one_out, one_out, one_out, one_out, one_out],
        scratch_shapes=[pltpu.VMEM((TH + 2 * _HALO, Wp), jnp.float32)],
    )

    vmem_limit = max(32 * 1024 * 1024, min(int(0.9 * vmem_cap), 2 * est))
    # TODO(synk): for extremely wide images where even an 8-row tile exceeds VMEM, add a
    # second (lane) tiling axis over W with a 128-lane halo.

    outs = pl.pallas_call(
        kernel,
        out_shape=out_shape,
        grid_spec=grid_spec,
        compiler_params=pltpu.CompilerParams(
            dimension_semantics=("parallel", "parallel"),
            vmem_limit_bytes=vmem_limit,
        ),
    )(img_p, img_p, img_p)

    if (Hp, Wp) != (H, W):
        outs = tuple(a[:, :, :H, :W] for a in outs)
    return outs


# ----------------------------------------------------------------------------
# Self-test
# ----------------------------------------------------------------------------
if __name__ == "__main__":
    key = jax.random.PRNGKey(0)
    x = jax.random.uniform(key, (2, 4, 16, 16), dtype=jnp.float32)

    outs = jax.block_until_ready(canny_filter(x))
    blurred, grad_x, grad_y, grad_mag, grad_ori, thin_edges = outs

    assert blurred.shape == (2, 4, 16, 16)
    assert grad_x.shape == (2, 1, 16, 16)
    assert grad_y.shape == (2, 1, 16, 16)
    assert grad_mag.shape == (2, 1, 16, 16)
    assert grad_ori.shape == (2, 1, 16, 16)
    assert thin_edges.shape == (2, 1, 16, 16)

    # NumPy reference for the smooth outputs (matches the torch forward math).
    xn = np.asarray(x, dtype=np.float64)
    B, C, H, W = xn.shape

    def conv2d_same(p2d, k):
        pad = np.pad(p2d, 1)
        out = np.zeros((H, W))
        for i in range(3):
            for j in range(3):
                out += k[i, j] * pad[i:i + H, j:j + W]
        return out

    blur_np = np.zeros((B, C, H, W))
    gx_np = np.zeros((B, 1, H, W))
    gy_np = np.zeros((B, 1, H, W))
    for b in range(B):
        for c in range(C):
            blur_np[b, c] = conv2d_same(xn[b, c], _GAUSS)
            gx_np[b, 0] += conv2d_same(blur_np[b, c], _SOBEL_X)
            gy_np[b, 0] += conv2d_same(blur_np[b, c], _SOBEL_X.T)
    gx_np /= C
    gy_np /= C
    mag_np = np.sqrt(gx_np ** 2 + gy_np ** 2)

    assert np.allclose(np.asarray(blurred), blur_np, rtol=1e-3, atol=1e-4)
    assert np.allclose(np.asarray(grad_x), gx_np, rtol=1e-3, atol=1e-4)
    assert np.allclose(np.asarray(grad_y), gy_np, rtol=1e-3, atol=1e-4)
    assert np.allclose(np.asarray(grad_mag), mag_np, rtol=1e-3, atol=1e-4)

    # Orientation: compare away from rounding-bucket boundaries (robust to ~1e-6 atan error).
    with np.errstate(divide="ignore", invalid="ignore"):
        raw_np = np.arctan(gy_np / gx_np) * (360.0 / np.pi) + 180.0
    ori_np = np.round(raw_np / 45.0) * 45.0
    finite = np.isfinite(raw_np)
    frac = np.abs(raw_np / 45.0 - np.round(raw_np / 45.0))
    safe = finite & (np.abs(frac - 0.5) > 1e-3)
    assert np.allclose(np.asarray(grad_ori)[safe], ori_np[safe], atol=1e-2)

    # thin_edges is either 0 or the (unsuppressed) gradient magnitude.
    thin_np = np.asarray(thin_edges)
    assert np.all((thin_np == 0) | np.isclose(thin_np, np.asarray(grad_mag), atol=1e-5))

    print("KERNEL_OK")
</pallas_src>

<mosaic_0001>
module attributes {stable_mosaic.version = 11 : i64} {
  func.func @kernel(%arg0: i32, %arg1: i32, %arg2: memref<1x4x16x128xf32, #tpu.memory_space<vmem>>, %arg3: memref<1x4x8x128xf32, #tpu.memory_space<vmem>>, %arg4: memref<1x4x8x128xf32, #tpu.memory_space<vmem>>, %arg5: memref<1x4x16x128xf32, #tpu.memory_space<vmem>>, %arg6: memref<1x1x16x128xf32, #tpu.memory_space<vmem>>, %arg7: memref<1x1x16x128xf32, #tpu.memory_space<vmem>>, %arg8: memref<1x1x16x128xf32, #tpu.memory_space<vmem>>, %arg9: memref<1x1x16x128xf32, #tpu.memory_space<vmem>>, %arg10: memref<1x1x16x128xf32, #tpu.memory_space<vmem>>, %arg11: memref<32x128xf32, #tpu.memory_space<vmem>>) attributes {dimension_semantics = [#tpu.dimension_semantics<parallel>, #tpu.dimension_semantics<parallel>], iteration_bounds = array<i64: 2, 1>, scalar_prefetch = 0 : i64, scratch_operands = 1 : i64, tpu.core_type = #tpu.core_type<tc>, window_params = [{transform_indices = @transform_0, window_bounds = array<i64: 1, 4, 16, 128>}, {transform_indices = @transform_1, window_bounds = array<i64: 1, 4, 8, 128>}, {transform_indices = @transform_2, window_bounds = array<i64: 1, 4, 8, 128>}, {transform_indices = @transform_3, window_bounds = array<i64: 1, 4, 16, 128>}, {transform_indices = @transform_4, window_bounds = array<i64: 1, 1, 16, 128>}, {transform_indices = @transform_5, window_bounds = array<i64: 1, 1, 16, 128>}, {transform_indices = @transform_6, window_bounds = array<i64: 1, 1, 16, 128>}, {transform_indices = @transform_7, window_bounds = array<i64: 1, 1, 16, 128>}, {transform_indices = @transform_8, window_bounds = array<i64: 1, 1, 16, 128>}]} {
    %c0_i32 = arith.constant 0 : i32
    %0 = arith.cmpi sgt, %arg1, %c0_i32 : i32
    %cst = arith.constant 1.000000e+00 : f32
    %cst_0 = arith.constant 0.000000e+00 : f32
    %1 = arith.select %0, %cst, %cst_0 : f32
    %c0_i32_1 = arith.constant 0 : i32
    %2 = arith.cmpi slt, %arg1, %c0_i32_1 : i32
    %cst_2 = arith.constant 1.000000e+00 : f32
    %cst_3 = arith.constant 0.000000e+00 : f32
    %3 = arith.select %2, %cst_2, %cst_3 : f32
    %cst_4 = arith.constant 0.000000e+00 : f32
    %4 = vector.broadcast %cst_4 : f32 to vector<32x128xf32>
    %c0 = arith.constant 0 : index
    %c0_5 = arith.constant 0 : index
    %c0_6 = arith.constant 0 : index
    %c0_7 = arith.constant 0 : index
    %5 = vector.load %arg3[%c0, %c0_5, %c0_6, %c0_7] : memref<1x4x8x128xf32, #tpu.memory_space<vmem>>, vector<1x1x8x128xf32>
    %6 = vector.shape_cast %5 : vector<1x1x8x128xf32> to vector<8x128xf32>
    %7 = vector.broadcast %1 : f32 to vector<8x128xf32>
    %8 = arith.mulf %6, %7 : vector<8x128xf32>
    %c0_8 = arith.constant 0 : index
    %c0_9 = arith.constant 0 : index
    %9 = vector.load %arg11[%c0_8, %c0_9] : memref<32x128xf32, #tpu.memory_space<vmem>>, vector<8x128xf32>
    tpu.vector_store %arg11[%c0_8, %c0_9], %8 {strides = array<i32>} : memref<32x128xf32, #tpu.memory_space<vmem>>, vector<8x128xf32>,
    %c0_10 = arith.constant 0 : index
    %c0_11 = arith.constant 0 : index
    %c0_12 = arith.constant 0 : index
    %c0_13 = arith.constant 0 : index
    %10 = vector.load %arg2[%c0_10, %c0_11, %c0_12, %c0_13] : memref<1x4x16x128xf32, #tpu.memory_space<vmem>>, vector<1x1x16x128xf32>
    %11 = vector.shape_cast %10 : vector<1x1x16x128xf32> to vector<16x128xf32>
    %c8 = arith.constant 8 : index
    %c0_14 = arith.constant 0 : index
    %12 = vector.load %arg11[%c8, %c0_14] : memref<32x128xf32, #tpu.memory_space<vmem>>, vector<16x128xf32>
    tpu.vector_store %arg11[%c8, %c0_14], %11 {strides = array<i32>} : memref<32x128xf32, #tpu.memory_space<vmem>>, vector<16x128xf32>,
    %c0_15 = arith.constant 0 : index
    %c0_16 = arith.constant 0 : index
    %c0_17 = arith.constant 0 : index
    %c0_18 = arith.constant 0 : index
    %13 = vector.load %arg4[%c0_15, %c0_16, %c0_17, %c0_18] : memref<1x4x8x128xf32, #tpu.memory_space<vmem>>, vector<1x1x8x128xf32>
    %14 = vector.shape_cast %13 : vector<1x1x8x128xf32> to vector<8x128xf32>
    %15 = vector.broadcast %3 : f32 to vector<8x128xf32>
    %16 = arith.mulf %14, %15 : vector<8x128xf32>
    %c24 = arith.constant 24 : index
    %c0_19 = arith.constant 0 : index
    %17 = vector.load %arg11[%c24, %c0_19] : memref<32x128xf32, #tpu.memory_space<vmem>>, vector<8x128xf32>
    tpu.vector_store %arg11[%c24, %c0_19], %16 {strides = array<i32>} : memref<32x128xf32, #tpu.memory_space<vmem>>, vector<8x128xf32>,
    %c0_20 = arith.constant 0 : index
    %c0_21 = arith.constant 0 : index
    %18 = vector.load %arg11[%c0_20, %c0_21] : memref<32x128xf32, #tpu.memory_space<vmem>>, vector<32x128xf32>
    %cst_22 = arith.constant 0.451862752 : f32
    %19 = vector.broadcast %cst_22 : f32 to vector<32x128xf32>
    %20 = arith.mulf %19, %18 : vector<32x128xf32>
    %c1_i32 = arith.constant 1 : i32
    %21 = tpu.dynamic_rotate %18 by %c1_i32 dim 0 : vector<32x128xf32>, i32 -> vector<32x128xf32>
    %c31_i32 = arith.constant 31 : i32
    %22 = tpu.dynamic_rotate %18 by %c31_i32 dim 0 : vector<32x128xf32>, i32 -> vector<32x128xf32>
    %23 = arith.addf %21, %22 : vector<32x128xf32>
    %cst_23 = arith.constant 0.274068624 : f32
    %24 = vector.broadcast %cst_23 : f32 to vector<32x128xf32>
    %25 = arith.mulf %24, %23 : vector<32x128xf32>
    %26 = arith.addf %20, %25 : vector<32x128xf32>
    %cst_24 = arith.constant 0.451862752 : f32
    %27 = vector.broadcast %cst_24 : f32 to vector<32x128xf32>
    %28 = arith.mulf %27, %26 : vector<32x128xf32>
    %c1_i32_25 = arith.constant 1 : i32
    %29 = tpu.dynamic_rotate %26 by %c1_i32_25 dim 1 : vector<32x128xf32>, i32 -> vector<32x128xf32>
    %c127_i32 = arith.constant 127 : i32
    %30 = tpu.dynamic_rotate %26 by %c127_i32 dim 1 : vector<32x128xf32>, i32 -> vector<32x128xf32>
    %31 = arith.addf %29, %30 : vector<32x128xf32>
    %cst_26 = arith.constant 0.274068624 : f32
    %32 = vector.broadcast %cst_26 : f32 to vector<32x128xf32>
    %33 = arith.mulf %32, %31 : vector<32x128xf32>
    %34 = arith.addf %28, %33 : vector<32x128xf32>
    %35 = vector.extract_strided_slice %34 {offsets = [8, 0], sizes = [16, 128], strides = [1, 1]} : vector<32x128xf32> to vector<16x128xf32>
    %c0_27 = arith.constant 0 : index
    %c0_28 = arith.constant 0 : index
    %c0_29 = arith.constant 0 : index
    %c0_30 = arith.constant 0 : index
    %36 = vector.load %arg5[%c0_27, %c0_28, %c0_29, %c0_30] : memref<1x4x16x128xf32, #tpu.memory_space<vmem>>, vector<1x1x16x128xf32>
    %37 = vector.shape_cast %36 : vector<1x1x16x128xf32> to vector<16x128xf32>
    %38 = vector.shape_cast %35 : vector<16x128xf32> to vector<1x1x16x128xf32>
    tpu.vector_store %arg5[%c0_27, %c0_28, %c0_29, %c0_30], %38 {strides = array<i32>} : memref<1x4x16x128xf32, #tpu.memory_space<vmem>>, vector<1x1x16x128xf32>,
    %39 = arith.addf %4, %34 : vector<32x128xf32>
    %c0_31 = arith.constant 0 : index
    %c1 = arith.constant 1 : index
    %c0_32 = arith.constant 0 : index
    %c0_33 = arith.constant 0 : index
    %40 = vector.load %arg3[%c0_31, %c1, %c0_32, %c0_33] : memref<1x4x8x128xf32, #tpu.memory_space<vmem>>, vector<1x1x8x128xf32>
    %41 = vector.shape_cast %40 : vector<1x1x8x128xf32> to vector<8x128xf32>
    %42 = vector.broadcast %1 : f32 to vector<8x128xf32>
    %43 = arith.mulf %41, %42 : vector<8x128xf32>
    %c0_34 = arith.constant 0 : index
    %c0_35 = arith.constant 0 : index
    %44 = vector.load %arg11[%c0_34, %c0_35] : memref<32x128xf32, #tpu.memory_space<vmem>>, vector<8x128xf32>
    tpu.vector_store %arg11[%c0_34, %c0_35], %43 {strides = array<i32>} : memref<32x128xf32, #tpu.memory_space<vmem>>, vector<8x128xf32>,
    %c0_36 = arith.constant 0 : index
    %c1_37 = arith.constant 1 : index
    %c0_38 = arith.constant 0 : index
    %c0_39 = arith.constant 0 : index
    %45 = vector.load %arg2[%c0_36, %c1_37, %c0_38, %c0_39] : memref<1x4x16x128xf32, #tpu.memory_space<vmem>>, vector<1x1x16x128xf32>
    %46 = vector.shape_cast %45 : vector<1x1x16x128xf32> to vector<16x128xf32>
    %c8_40 = arith.constant 8 : index
    %c0_41 = arith.constant 0 : index
    %47 = vector.load %arg11[%c8_40, %c0_41] : memref<32x128xf32, #tpu.memory_space<vmem>>, vector<16x128xf32>
    tpu.vector_store %arg11[%c8_40, %c0_41], %46 {strides = array<i32>} : memref<32x128xf32, #tpu.memory_space<vmem>>, vector<16x128xf32>,
    %c0_42 = arith.constant 0 : index
    %c1_43 = arith.constant 1 : index
    %c0_44 = arith.constant 0 : index
    %c0_45 = arith.constant 0 : index
    %48 = vector.load %arg4[%c0_42, %c1_43, %c0_44, %c0_45] : memref<1x4x8x128xf32, #tpu.memory_space<vmem>>, vector<1x1x8x128xf32>
    %49 = vector.shape_cast %48 : vector<1x1x8x128xf32> to vector<8x128xf32>
    %50 = vector.broadcast %3 : f32 to vector<8x128xf32>
    %51 = arith.mulf %49, %50 : vector<8x128xf32>
    %c24_46 = arith.constant 24 : index
    %c0_47 = arith.constant 0 : index
    %52 = vector.load %arg11[%c24_46, %c0_47] : memref<32x128xf32, #tpu.memory_space<vmem>>, vector<8x128xf32>
    tpu.vector_store %arg11[%c24_46, %c0_47], %51 {strides = array<i32>} : memref<32x128xf32, #tpu.memory_space<vmem>>, vector<8x128xf32>,
    %c0_48 = arith.constant 0 : index
    %c0_49 = arith.constant 0 : index
    %53 = vector.load %arg11[%c0_48, %c0_49] : memref<32x128xf32, #tpu.memory_space<vmem>>, vector<32x128xf32>
    %cst_50 = arith.constant 0.451862752 : f32
    %54 = vector.broadcast %cst_50 : f32 to vector<32x128xf32>
    %55 = arith.mulf %54, %53 : vector<32x128xf32>
    %c1_i32_51 = arith.constant 1 : i32
    %56 = tpu.dynamic_rotate %53 by %c1_i32_51 dim 0 : vector<32x128xf32>, i32 -> vector<32x128xf32>
    %c31_i32_52 = arith.constant 31 : i32
    %57 = tpu.dynamic_rotate %53 by %c31_i32_52 dim 0 : vector<32x128xf32>, i32 -> vector<32x128xf32>
    %58 = arith.addf %56, %57 : vector<32x128xf32>
    %cst_53 = arith.constant 0.274068624 : f32
    %59 = vector.broadcast %cst_53 : f32 to vector<32x128xf32>
    %60 = arith.mulf %59, %58 : vector<32x128xf32>
    %61 = arith.addf %55, %60 : vector<32x128xf32>
    %cst_54 = arith.constant 0.451862752 : f32
    %62 = vector.broadcast %cst_54 : f32 to vector<32x128xf32>
    %63 = arith.mulf %62, %61 : vector<32x128xf32>
    %c1_i32_55 = arith.constant 1 : i32
    %64 = tpu.dynamic_rotate %61 by %c1_i32_55 dim 1 : vector<32x128xf32>, i32 -> vector<32x128xf32>
    %c127_i32_56 = arith.constant 127 : i32
    %65 = tpu.dynamic_rotate %61 by %c127_i32_56 dim 1 : vector<32x128xf32>, i32 -> vector<32x128xf32>
    %66 = arith.addf %64, %65 : vector<32x128xf32>
    %cst_57 = arith.constant 0.274068624 : f32
    %67 = vector.broadcast %cst_57 : f32 to vector<32x128xf32>
    %68 = arith.mulf %67, %66 : vector<32x128xf32>
    %69 = arith.addf %63, %68 : vector<32x128xf32>
    %70 = vector.extract_strided_slice %69 {offsets = [8, 0], sizes = [16, 128], strides = [1, 1]} : vector<32x128xf32> to vector<16x128xf32>
    %c0_58 = arith.constant 0 : index
    %c1_59 = arith.constant 1 : index
    %c0_60 = arith.constant 0 : index
    %c0_61 = arith.constant 0 : index
    %71 = vector.load %arg5[%c0_58, %c1_59, %c0_60, %c0_61] : memref<1x4x16x128xf32, #tpu.memory_space<vmem>>, vector<1x1x16x128xf32>
    %72 = vector.shape_cast %71 : vector<1x1x16x128xf32> to vector<16x128xf32>
    %73 = vector.shape_cast %70 : vector<16x128xf32> to vector<1x1x16x128xf32>
    tpu.vector_store %arg5[%c0_58, %c1_59, %c0_60, %c0_61], %73 {strides = array<i32>} : memref<1x4x16x128xf32, #tpu.memory_space<vmem>>, vector<1x1x16x128xf32>,
    %74 = arith.addf %39, %69 : vector<32x128xf32>
    %c0_62 = arith.constant 0 : index
    %c2 = arith.constant 2 : index
    %c0_63 = arith.constant 0 : index
    %c0_64 = arith.constant 0 : index
    %75 = vector.load %arg3[%c0_62, %c2, %c0_63, %c0_64] : memref<1x4x8x128xf32, #tpu.memory_space<vmem>>, vector<1x1x8x128xf32>
    %76 = vector.shape_cast %75 : vector<1x1x8x128xf32> to vector<8x128xf32>
    %77 = vector.broadcast %1 : f32 to vector<8x128xf32>
    %78 = arith.mulf %76, %77 : vector<8x128xf32>
    %c0_65 = arith.constant 0 : index
    %c0_66 = arith.constant 0 : index
    %79 = vector.load %arg11[%c0_65, %c0_66] : memref<32x128xf32, #tpu.memory_space<vmem>>, vector<8x128xf32>
    tpu.vector_store %arg11[%c0_65, %c0_66], %78 {strides = array<i32>} : memref<32x128xf32, #tpu.memory_space<vmem>>, vector<8x128xf32>,
    %c0_67 = arith.constant 0 : index
    %c2_68 = arith.constant 2 : index
    %c0_69 = arith.constant 0 : index
    %c0_70 = arith.constant 0 : index
    %80 = vector.load %arg2[%c0_67, %c2_68, %c0_69, %c0_70] : memref<1x4x16x128xf32, #tpu.memory_space<vmem>>, vector<1x1x16x128xf32>
    %81 = vector.shape_cast %80 : vector<1x1x16x128xf32> to vector<16x128xf32>
    %c8_71 = arith.constant 8 : index
    %c0_72 = arith.constant 0 : index
    %82 = vector.load %arg11[%c8_71, %c0_72] : memref<32x128xf32, #tpu.memory_space<vmem>>, vector<16x128xf32>
    tpu.vector_store %arg11[%c8_71, %c0_72], %81 {strides = array<i32>} : memref<32x128xf32, #tpu.memory_space<vmem>>, vector<16x128xf32>,
    %c0_73 = arith.constant 0 : index
    %c2_74 = arith.constant 2 : index
    %c0_75 = arith.constant 0 : index
    %c0_76 = arith.constant 0 : index
    %83 = vector.load %arg4[%c0_73, %c2_74, %c0_75, %c0_76] : memref<1x4x8x128xf32, #tpu.memory_space<vmem>>, vector<1x1x8x128xf32>
    %84 = vector.shape_cast %83 : vector<1x1x8x128xf32> to vector<8x128xf32>
    %85 = vector.broadcast %3 : f32 to vector<8x128xf32>
    %86 = arith.mulf %84, %85 : vector<8x128xf32>
    %c24_77 = arith.constant 24 : index
    %c0_78 = arith.constant 0 : index
    %87 = vector.load %arg11[%c24_77, %c0_78] : memref<32x128xf32, #tpu.memory_space<vmem>>, vector<8x128xf32>
    tpu.vector_store %arg11[%c24_77, %c0_78], %86 {strides = array<i32>} : memref<32x128xf32, #tpu.memory_space<vmem>>, vector<8x128xf32>,
    %c0_79 = arith.constant 0 : index
    %c0_80 = arith.constant 0 : index
    %88 = vector.load %arg11[%c0_79, %c0_80] : memref<32x128xf32, #tpu.memory_space<vmem>>, vector<32x128xf32>
    %cst_81 = arith.constant 0.451862752 : f32
    %89 = vector.broadcast %cst_81 : f32 to vector<32x128xf32>
    %90 = arith.mulf %89, %88 : vector<32x128xf32>
    %c1_i32_82 = arith.constant 1 : i32
    %91 = tpu.dynamic_rotate %88 by %c1_i32_82 dim 0 : vector<32x128xf32>, i32 -> vector<32x128xf32>
    %c31_i32_83 = arith.constant 31 : i32
    %92 = tpu.dynamic_rotate %88 by %c31_i32_83 dim 0 : vector<32x128xf32>, i32 -> vector<32x128xf32>
    %93 = arith.addf %91, %92 : vector<32x128xf32>
    %cst_84 = arith.constant 0.274068624 : f32
    %94 = vector.broadcast %cst_84 : f32 to vector<32x128xf32>
    %95 = arith.mulf %94, %93 : vector<32x128xf32>
    %96 = arith.addf %90, %95 : vector<32x128xf32>
    %cst_85 = arith.constant 0.451862752 : f32
    %97 = vector.broadcast %cst_85 : f32 to vector<32x128xf32>
    %98 = arith.mulf %97, %96 : vector<32x128xf32>
    %c1_i32_86 = arith.constant 1 : i32
    %99 = tpu.dynamic_rotate %96 by %c1_i32_86 dim 1 : vector<32x128xf32>, i32 -> vector<32x128xf32>
    %c127_i32_87 = arith.constant 127 : i32
    %100 = tpu.dynamic_rotate %96 by %c127_i32_87 dim 1 : vector<32x128xf32>, i32 -> vector<32x128xf32>
    %101 = arith.addf %99, %100 : vector<32x128xf32>
    %cst_88 = arith.constant 0.274068624 : f32
    %102 = vector.broadcast %cst_88 : f32 to vector<32x128xf32>
    %103 = arith.mulf %102, %101 : vector<32x128xf32>
    %104 = arith.addf %98, %103 : vector<32x128xf32>
    %105 = vector.extract_strided_slice %104 {offsets = [8, 0], sizes = [16, 128], strides = [1, 1]} : vector<32x128xf32> to vector<16x128xf32>
    %c0_89 = arith.constant 0 : index
    %c2_90 = arith.constant 2 : index
    %c0_91 = arith.constant 0 : index
    %c0_92 = arith.constant 0 : index
    %106 = vector.load %arg5[%c0_89, %c2_90, %c0_91, %c0_92] : memref<1x4x16x128xf32, #tpu.memory_space<vmem>>, vector<1x1x16x128xf32>
    %107 = vector.shape_cast %106 : vector<1x1x16x128xf32> to vector<16x128xf32>
    %108 = vector.shape_cast %105 : vector<16x128xf32> to vector<1x1x16x128xf32>
    tpu.vector_store %arg5[%c0_89, %c2_90, %c0_91, %c0_92], %108 {strides = array<i32>} : memref<1x4x16x128xf32, #tpu.memory_space<vmem>>, vector<1x1x16x128xf32>,
    %109 = arith.addf %74, %104 : vector<32x128xf32>
    %c0_93 = arith.constant 0 : index
    %c3 = arith.constant 3 : index
    %c0_94 = arith.constant 0 : index
    %c0_95 = arith.constant 0 : index
    %110 = vector.load %arg3[%c0_93, %c3, %c0_94, %c0_95] : memref<1x4x8x128xf32, #tpu.memory_space<vmem>>, vector<1x1x8x128xf32>
    %111 = vector.shape_cast %110 : vector<1x1x8x128xf32> to vector<8x128xf32>
    %112 = vector.broadcast %1 : f32 to vector<8x128xf32>
    %113 = arith.mulf %111, %112 : vector<8x128xf32>
    %c0_96 = arith.constant 0 : index
    %c0_97 = arith.constant 0 : index
    %114 = vector.load %arg11[%c0_96, %c0_97] : memref<32x128xf32, #tpu.memory_space<vmem>>, vector<8x128xf32>
    tpu.vector_store %arg11[%c0_96, %c0_97], %113 {strides = array<i32>} : memref<32x128xf32, #tpu.memory_space<vmem>>, vector<8x128xf32>,
    %c0_98 = arith.constant 0 : index
    %c3_99 = arith.constant 3 : index
    %c0_100 = arith.constant 0 : index
    %c0_101 = arith.constant 0 : index
    %115 = vector.load %arg2[%c0_98, %c3_99, %c0_100, %c0_101] : memref<1x4x16x128xf32, #tpu.memory_space<vmem>>, vector<1x1x16x128xf32>
    %116 = vector.shape_cast %115 : vector<1x1x16x128xf32> to vector<16x128xf32>
    %c8_102 = arith.constant 8 : index
    %c0_103 = arith.constant 0 : index
    %117 = vector.load %arg11[%c8_102, %c0_103] : memref<32x128xf32, #tpu.memory_space<vmem>>, vector<16x128xf32>
    tpu.vector_store %arg11[%c8_102, %c0_103], %116 {strides = array<i32>} : memref<32x128xf32, #tpu.memory_space<vmem>>, vector<16x128xf32>,
    %c0_104 = arith.constant 0 : index
    %c3_105 = arith.constant 3 : index
    %c0_106 = arith.constant 0 : index
    %c0_107 = arith.constant 0 : index
    %118 = vector.load %arg4[%c0_104, %c3_105, %c0_106, %c0_107] : memref<1x4x8x128xf32, #tpu.memory_space<vmem>>, vector<1x1x8x128xf32>
    %119 = vector.shape_cast %118 : vector<1x1x8x128xf32> to vector<8x128xf32>
    %120 = vector.broadcast %3 : f32 to vector<8x128xf32>
    %121 = arith.mulf %119, %120 : vector<8x128xf32>
    %c24_108 = arith.constant 24 : index
    %c0_109 = arith.constant 0 : index
    %122 = vector.load %arg11[%c24_108, %c0_109] : memref<32x128xf32, #tpu.memory_space<vmem>>, vector<8x128xf32>
    tpu.vector_store %arg11[%c24_108, %c0_109], %121 {strides = array<i32>} : memref<32x128xf32, #tpu.memory_space<vmem>>, vector<8x128xf32>,
    %c0_110 = arith.constant 0 : index
    %c0_111 = arith.constant 0 : index
    %123 = vector.load %arg11[%c0_110, %c0_111] : memref<32x128xf32, #tpu.memory_space<vmem>>, vector<32x128xf32>
    %cst_112 = arith.constant 0.451862752 : f32
    %124 = vector.broadcast %cst_112 : f32 to vector<32x128xf32>
    %125 = arith.mulf %124, %123 : vector<32x128xf32>
    %c1_i32_113 = arith.constant 1 : i32
    %126 = tpu.dynamic_rotate %123 by %c1_i32_113 dim 0 : vector<32x128xf32>, i32 -> vector<32x128xf32>
    %c31_i32_114 = arith.constant 31 : i32
    %127 = tpu.dynamic_rotate %123 by %c31_i32_114 dim 0 : vector<32x128xf32>, i32 -> vector<32x128xf32>
    %128 = arith.addf %126, %127 : vector<32x128xf32>
    %cst_115 = arith.constant 0.274068624 : f32
    %129 = vector.broadcast %cst_115 : f32 to vector<32x128xf32>
    %130 = arith.mulf %129, %128 : vector<32x128xf32>
    %131 = arith.addf %125, %130 : vector<32x128xf32>
    %cst_116 = arith.constant 0.451862752 : f32
    %132 = vector.broadcast %cst_116 : f32 to vector<32x128xf32>
    %133 = arith.mulf %132, %131 : vector<32x128xf32>
    %c1_i32_117 = arith.constant 1 : i32
    %134 = tpu.dynamic_rotate %131 by %c1_i32_117 dim 1 : vector<32x128xf32>, i32 -> vector<32x128xf32>
    %c127_i32_118 = arith.constant 127 : i32
    %135 = tpu.dynamic_rotate %131 by %c127_i32_118 dim 1 : vector<32x128xf32>, i32 -> vector<32x128xf32>
    %136 = arith.addf %134, %135 : vector<32x128xf32>
    %cst_119 = arith.constant 0.274068624 : f32
    %137 = vector.broadcast %cst_119 : f32 to vector<32x128xf32>
    %138 = arith.mulf %137, %136 : vector<32x128xf32>
    %139 = arith.addf %133, %138 : vector<32x128xf32>
    %140 = vector.extract_strided_slice %139 {offsets = [8, 0], sizes = [16, 128], strides = [1, 1]} : vector<32x128xf32> to vector<16x128xf32>
    %c0_120 = arith.constant 0 : index
    %c3_121 = arith.constant 3 : index
    %c0_122 = arith.constant 0 : index
    %c0_123 = arith.constant 0 : index
    %141 = vector.load %arg5[%c0_120, %c3_121, %c0_122, %c0_123] : memref<1x4x16x128xf32, #tpu.memory_space<vmem>>, vector<1x1x16x128xf32>
    %142 = vector.shape_cast %141 : vector<1x1x16x128xf32> to vector<16x128xf32>
    %143 = vector.shape_cast %140 : vector<16x128xf32> to vector<1x1x16x128xf32>
    tpu.vector_store %arg5[%c0_120, %c3_121, %c0_122, %c0_123], %143 {strides = array<i32>} : memref<1x4x16x128xf32, #tpu.memory_space<vmem>>, vector<1x1x16x128xf32>,
    %144 = arith.addf %109, %139 : vector<32x128xf32>
    %145 = tpu.iota {dimensions = array<i32: 0>} : vector<32x128xi32>
    %c16_i32 = arith.constant 16 : i32
    %146 = arith.muli %arg1, %c16_i32 : i32
    %c8_i32 = arith.constant 8 : i32
    %147 = arith.subi %146, %c8_i32 : i32
    %148 = vector.broadcast %147 : i32 to vector<32x128xi32>
    %149 = arith.addi %145, %148 : vector<32x128xi32>
    %c0_i32_124 = arith.constant 0 : i32
    %150 = vector.broadcast %c0_i32_124 : i32 to vector<32x128xi32>
    %151 = arith.cmpi sge, %149, %150 : vector<32x128xi32>
    %c16_i32_125 = arith.constant 16 : i32
    %152 = vector.broadcast %c16_i32_125 : i32 to vector<32x128xi32>
    %153 = arith.cmpi slt, %149, %152 : vector<32x128xi32>
    %154 = arith.andi %151, %153 : vector<32x128xi1>
    %155 = tpu.iota {dimensions = array<i32: 1>} : vector<32x128xi32>
    %c16_i32_126 = arith.constant 16 : i32
    %156 = vector.broadcast %c16_i32_126 : i32 to vector<32x128xi32>
    %157 = arith.cmpi slt, %155, %156 : vector<32x128xi32>
    %158 = arith.andi %154, %157 : vector<32x128xi1>
    %cst_127 = arith.constant 0.000000e+00 : f32
    %159 = vector.broadcast %cst_127 : f32 to vector<32x128xf32>
    %160 = arith.select %158, %144, %159 : vector<32x128xi1>, vector<32x128xf32>
    %c1_i32_128 = arith.constant 1 : i32
    %161 = tpu.dynamic_rotate %160 by %c1_i32_128 dim 0 : vector<32x128xf32>, i32 -> vector<32x128xf32>
    %c31_i32_129 = arith.constant 31 : i32
    %162 = tpu.dynamic_rotate %160 by %c31_i32_129 dim 0 : vector<32x128xf32>, i32 -> vector<32x128xf32>
    %163 = arith.addf %161, %162 : vector<32x128xf32>
    %cst_130 = arith.constant 5.000000e-01 : f32
    %164 = vector.broadcast %cst_130 : f32 to vector<32x128xf32>
    %165 = arith.mulf %164, %163 : vector<32x128xf32>
    %166 = arith.addf %160, %165 : vector<32x128xf32>
    %c127_i32_131 = arith.constant 127 : i32
    %167 = tpu.dynamic_rotate %166 by %c127_i32_131 dim 1 : vector<32x128xf32>, i32 -> vector<32x128xf32>
    %c1_i32_132 = arith.constant 1 : i32
    %168 = tpu.dynamic_rotate %166 by %c1_i32_132 dim 1 : vector<32x128xf32>, i32 -> vector<32x128xf32>
    %169 = arith.subf %167, %168 : vector<32x128xf32>
    %cst_133 = arith.constant 2.500000e-01 : f32
    %170 = vector.broadcast %cst_133 : f32 to vector<32x128xf32>
    %171 = arith.mulf %169, %170 : vector<32x128xf32>
    %172 = arith.subf %162, %161 : vector<32x128xf32>
    %c127_i32_134 = arith.constant 127 : i32
    %173 = tpu.dynamic_rotate %172 by %c127_i32_134 dim 1 : vector<32x128xf32>, i32 -> vector<32x128xf32>
    %c1_i32_135 = arith.constant 1 : i32
    %174 = tpu.dynamic_rotate %172 by %c1_i32_135 dim 1 : vector<32x128xf32>, i32 -> vector<32x128xf32>
    %175 = arith.addf %173, %174 : vector<32x128xf32>
    %cst_136 = arith.constant 5.000000e-01 : f32
    %176 = vector.broadcast %cst_136 : f32 to vector<32x128xf32>
    %177 = arith.mulf %176, %175 : vector<32x128xf32>
    %178 = arith.addf %172, %177 : vector<32x128xf32>
    %cst_137 = arith.constant 2.500000e-01 : f32
    %179 = vector.broadcast %cst_137 : f32 to vector<32x128xf32>
    %180 = arith.mulf %178, %179 : vector<32x128xf32>
    %181 = vector.extract_strided_slice %171 {offsets = [8, 0], sizes = [16, 128], strides = [1, 1]} : vector<32x128xf32> to vector<16x128xf32>
    %182 = vector.extract_strided_slice %180 {offsets = [8, 0], sizes = [16, 128], strides = [1, 1]} : vector<32x128xf32> to vector<16x128xf32>
    %c0_138 = arith.constant 0 : index
    %c0_139 = arith.constant 0 : index
    %c0_140 = arith.constant 0 : index
    %c0_141 = arith.constant 0 : index
    %183 = vector.load %arg6[%c0_138, %c0_139, %c0_140, %c0_141] : memref<1x1x16x128xf32, #tpu.memory_space<vmem>>, vector<1x1x16x128xf32>
    %184 = vector.shape_cast %183 : vector<1x1x16x128xf32> to vector<16x128xf32>
    %185 = vector.shape_cast %181 : vector<16x128xf32> to vector<1x1x16x128xf32>
    tpu.vector_store %arg6[%c0_138, %c0_139, %c0_140, %c0_141], %185 {strides = array<i32>} : memref<1x1x16x128xf32, #tpu.memory_space<vmem>>, vector<1x1x16x128xf32>,
    %c0_142 = arith.constant 0 : index
    %c0_143 = arith.constant 0 : index
    %c0_144 = arith.constant 0 : index
    %c0_145 = arith.constant 0 : index
    %186 = vector.load %arg7[%c0_142, %c0_143, %c0_144, %c0_145] : memref<1x1x16x128xf32, #tpu.memory_space<vmem>>, vector<1x1x16x128xf32>
    %187 = vector.shape_cast %186 : vector<1x1x16x128xf32> to vector<16x128xf32>
    %188 = vector.shape_cast %182 : vector<16x128xf32> to vector<1x1x16x128xf32>
    tpu.vector_store %arg7[%c0_142, %c0_143, %c0_144, %c0_145], %188 {strides = array<i32>} : memref<1x1x16x128xf32, #tpu.memory_space<vmem>>, vector<1x1x16x128xf32>,
    %189 = arith.mulf %171, %171 : vector<32x128xf32>
    %190 = arith.mulf %180, %180 : vector<32x128xf32>
    %191 = arith.addf %189, %190 : vector<32x128xf32>
    %192 = math.sqrt %191 : vector<32x128xf32>
    %193 = vector.extract_strided_slice %192 {offsets = [8, 0], sizes = [16, 128], strides = [1, 1]} : vector<32x128xf32> to vector<16x128xf32>
    %c0_146 = arith.constant 0 : index
    %c0_147 = arith.constant 0 : index
    %c0_148 = arith.constant 0 : index
    %c0_149 = arith.constant 0 : index
    %194 = vector.load %arg8[%c0_146, %c0_147, %c0_148, %c0_149] : memref<1x1x16x128xf32, #tpu.memory_space<vmem>>, vector<1x1x16x128xf32>
    %195 = vector.shape_cast %194 : vector<1x1x16x128xf32> to vector<16x128xf32>
    %196 = vector.shape_cast %193 : vector<16x128xf32> to vector<1x1x16x128xf32>
    tpu.vector_store %arg8[%c0_146, %c0_147, %c0_148, %c0_149], %196 {strides = array<i32>} : memref<1x1x16x128xf32, #tpu.memory_space<vmem>>, vector<1x1x16x128xf32>,
    %197 = arith.divf %182, %181 : vector<16x128xf32>
    %198 = math.absf %197 : vector<16x128xf32>
    %cst_150 = arith.constant 2.41421366 : f32
    %199 = vector.broadcast %cst_150 : f32 to vector<16x128xf32>
    %200 = arith.cmpf ogt, %198, %199 : vector<16x128xf32>
    %cst_151 = arith.constant 0.414213568 : f32
    %201 = vector.broadcast %cst_151 : f32 to vector<16x128xf32>
    %202 = arith.cmpf ogt, %198, %201 : vector<16x128xf32>
    %cst_152 = arith.constant 0.785398185 : f32
    %cst_153 = arith.constant 0.000000e+00 : f32
    %203 = vector.broadcast %cst_152 : f32 to vector<16x128xf32>
    %204 = vector.broadcast %cst_153 : f32 to vector<16x128xf32>
    %205 = arith.select %202, %203, %204 : vector<16x128xi1>, vector<16x128xf32>
    %cst_154 = arith.constant 1.57079637 : f32
    %206 = vector.broadcast %cst_154 : f32 to vector<16x128xf32>
    %207 = arith.select %200, %206, %205 : vector<16x128xi1>, vector<16x128xf32>
    %208 = tpu.reciprocal %198 {approx = true} : vector<16x128xf32> -> vector<16x128xf32>
    %cst_155 = arith.constant 0.000000e+00 : f32
    %209 = vector.broadcast %cst_155 : f32 to vector<16x128xf32>
    %210 = arith.subf %209, %208 : vector<16x128xf32>
    %cst_156 = arith.constant 1.000000e+00 : f32
    %211 = vector.broadcast %cst_156 : f32 to vector<16x128xf32>
    %212 = arith.subf %198, %211 : vector<16x128xf32>
    %cst_157 = arith.constant 1.000000e+00 : f32
    %213 = vector.broadcast %cst_157 : f32 to vector<16x128xf32>
    %214 = arith.addf %198, %213 : vector<16x128xf32>
    %215 = tpu.reciprocal %214 {approx = true} : vector<16x128xf32> -> vector<16x128xf32>
    %216 = arith.mulf %212, %215 : vector<16x128xf32>
    %217 = arith.select %202, %216, %198 : vector<16x128xi1>, vector<16x128xf32>
    %218 = arith.select %200, %210, %217 : vector<16x128xi1>, vector<16x128xf32>
    %219 = arith.mulf %218, %218 : vector<16x128xf32>
    %cst_158 = arith.constant 0.0805374458 : f32
    %220 = vector.broadcast %cst_158 : f32 to vector<16x128xf32>
    %221 = arith.mulf %220, %219 : vector<16x128xf32>
    %cst_159 = arith.constant 0.138776854 : f32
    %222 = vector.broadcast %cst_159 : f32 to vector<16x128xf32>
    %223 = arith.subf %221, %222 : vector<16x128xf32>
    %224 = arith.mulf %223, %219 : vector<16x128xf32>
    %cst_160 = arith.constant 0.199777111 : f32
    %225 = vector.broadcast %cst_160 : f32 to vector<16x128xf32>
    %226 = arith.addf %224, %225 : vector<16x128xf32>
    %227 = arith.mulf %226, %219 : vector<16x128xf32>
    %cst_161 = arith.constant 0.333329499 : f32
    %228 = vector.broadcast %cst_161 : f32 to vector<16x128xf32>
    %229 = arith.subf %227, %228 : vector<16x128xf32>
    %230 = arith.mulf %229, %219 : vector<16x128xf32>
    %231 = arith.mulf %230, %218 : vector<16x128xf32>
    %232 = arith.addf %231, %218 : vector<16x128xf32>
    %233 = arith.addf %207, %232 : vector<16x128xf32>
    %cst_162 = arith.constant 0.000000e+00 : f32
    %234 = vector.broadcast %cst_162 : f32 to vector<16x128xf32>
    %235 = arith.cmpf olt, %197, %234 : vector<16x128xf32>
    %cst_163 = arith.constant 0.000000e+00 : f32
    %236 = vector.broadcast %cst_163 : f32 to vector<16x128xf32>
    %237 = arith.subf %236, %233 : vector<16x128xf32>
    %238 = arith.select %235, %237, %233 : vector<16x128xi1>, vector<16x128xf32>
    %cst_164 = arith.constant 114.59156 : f32
    %239 = vector.broadcast %cst_164 : f32 to vector<16x128xf32>
    %240 = arith.mulf %238, %239 : vector<16x128xf32>
    %cst_165 = arith.constant 1.800000e+02 : f32
    %241 = vector.broadcast %cst_165 : f32 to vector<16x128xf32>
    %242 = arith.addf %240, %241 : vector<16x128xf32>
    %cst_166 = arith.constant 0.0222222228 : f32
    %243 = vector.broadcast %cst_166 : f32 to vector<16x128xf32>
    %244 = arith.mulf %242, %243 : vector<16x128xf32>
    %245 = math.roundeven %244 : vector<16x128xf32>
    %cst_167 = arith.constant 4.500000e+01 : f32
    %246 = vector.broadcast %cst_167 : f32 to vector<16x128xf32>
    %247 = arith.mulf %245, %246 : vector<16x128xf32>
    %c0_168 = arith.constant 0 : index
    %c0_169 = arith.constant 0 : index
    %c0_170 = arith.constant 0 : index
    %c0_171 = arith.constant 0 : index
    %248 = vector.load %arg9[%c0_168, %c0_169, %c0_170, %c0_171] : memref<1x1x16x128xf32, #tpu.memory_space<vmem>>, vector<1x1x16x128xf32>
    %249 = vector.shape_cast %248 : vector<1x1x16x128xf32> to vector<16x128xf32>
    %250 = vector.shape_cast %247 : vector<16x128xf32> to vector<1x1x16x128xf32>
    tpu.vector_store %arg9[%c0_168, %c0_169, %c0_170, %c0_171], %250 {strides = array<i32>} : memref<1x1x16x128xf32, #tpu.memory_space<vmem>>, vector<1x1x16x128xf32>,
    %cst_172 = arith.constant 8.000000e+00 : f32
    %251 = vector.broadcast %cst_172 : f32 to vector<16x128xf32>
    %252 = arith.cmpf oeq, %245, %251 : vector<16x128xf32>
    %cst_173 = arith.constant 0.000000e+00 : f32
    %253 = vector.broadcast %cst_173 : f32 to vector<16x128xf32>
    %254 = arith.select %252, %253, %245 : vector<16x128xi1>, vector<16x128xf32>
    %255 = tpu.iota {dimensions = array<i32: 0>} : vector<32x128xi32>
    %c16_i32_174 = arith.constant 16 : i32
    %256 = arith.muli %arg1, %c16_i32_174 : i32
    %c8_i32_175 = arith.constant 8 : i32
    %257 = arith.subi %256, %c8_i32_175 : i32
    %258 = vector.broadcast %257 : i32 to vector<32x128xi32>
    %259 = arith.addi %255, %258 : vector<32x128xi32>
    %c0_i32_176 = arith.constant 0 : i32
    %260 = vector.broadcast %c0_i32_176 : i32 to vector<32x128xi32>
    %261 = arith.cmpi sge, %259, %260 : vector<32x128xi32>
    %c16_i32_177 = arith.constant 16 : i32
    %262 = vector.broadcast %c16_i32_177 : i32 to vector<32x128xi32>
    %263 = arith.cmpi slt, %259, %262 : vector<32x128xi32>
    %264 = arith.andi %261, %263 : vector<32x128xi1>
    %265 = tpu.iota {dimensions = array<i32: 1>} : vector<32x128xi32>
    %c16_i32_178 = arith.constant 16 : i32
    %266 = vector.broadcast %c16_i32_178 : i32 to vector<32x128xi32>
    %267 = arith.cmpi slt, %265, %266 : vector<32x128xi32>
    %268 = arith.andi %264, %267 : vector<32x128xi1>
    %cst_179 = arith.constant 0.000000e+00 : f32
    %269 = vector.broadcast %cst_179 : f32 to vector<32x128xf32>
    %270 = arith.select %268, %192, %269 : vector<32x128xi1>, vector<32x128xf32>
    %c1_i32_180 = arith.constant 1 : i32
    %271 = tpu.dynamic_rotate %270 by %c1_i32_180 dim 0 : vector<32x128xf32>, i32 -> vector<32x128xf32>
    %c31_i32_181 = arith.constant 31 : i32
    %272 = tpu.dynamic_rotate %270 by %c31_i32_181 dim 0 : vector<32x128xf32>, i32 -> vector<32x128xf32>
    %c1_i32_182 = arith.constant 1 : i32
    %273 = tpu.dynamic_rotate %270 by %c1_i32_182 dim 1 : vector<32x128xf32>, i32 -> vector<32x128xf32>
    %c127_i32_183 = arith.constant 127 : i32
    %274 = tpu.dynamic_rotate %270 by %c127_i32_183 dim 1 : vector<32x128xf32>, i32 -> vector<32x128xf32>
    %c1_i32_184 = arith.constant 1 : i32
    %275 = tpu.dynamic_rotate %271 by %c1_i32_184 dim 1 : vector<32x128xf32>, i32 -> vector<32x128xf32>
    %c127_i32_185 = arith.constant 127 : i32
    %276 = tpu.dynamic_rotate %271 by %c127_i32_185 dim 1 : vector<32x128xf32>, i32 -> vector<32x128xf32>
    %c1_i32_186 = arith.constant 1 : i32
    %277 = tpu.dynamic_rotate %272 by %c1_i32_186 dim 1 : vector<32x128xf32>, i32 -> vector<32x128xf32>
    %c127_i32_187 = arith.constant 127 : i32
    %278 = tpu.dynamic_rotate %272 by %c127_i32_187 dim 1 : vector<32x128xf32>, i32 -> vector<32x128xf32>
    %279 = vector.extract_strided_slice %270 {offsets = [8, 0], sizes = [16, 128], strides = [1, 1]} : vector<32x128xf32> to vector<16x128xf32>
    %cst_188 = arith.constant 0.000000e+00 : f32
    %280 = vector.broadcast %cst_188 : f32 to vector<16x128xf32>
    %281 = arith.cmpf oeq, %254, %280 : vector<16x128xf32>
    %cst_189 = arith.constant 4.000000e+00 : f32
    %282 = vector.broadcast %cst_189 : f32 to vector<16x128xf32>
    %283 = arith.cmpf oeq, %254, %282 : vector<16x128xf32>
    %284 = arith.ori %281, %283 : vector<16x128xi1>
    %285 = vector.extract_strided_slice %274 {offsets = [8, 0], sizes = [16, 128], strides = [1, 1]} : vector<32x128xf32> to vector<16x128xf32>
    %286 = arith.cmpf ogt, %279, %285 : vector<16x128xf32>
    %287 = vector.extract_strided_slice %273 {offsets = [8, 0], sizes = [16, 128], strides = [1, 1]} : vector<32x128xf32> to vector<16x128xf32>
    %288 = arith.cmpf ogt, %279, %287 : vector<16x128xf32>
    %289 = arith.andi %286, %288 : vector<16x128xi1>
    %cst_190 = arith.constant dense<true> : vector<16x128xi1>
    %290 = arith.xori %289, %cst_190 : vector<16x128xi1>
    %291 = arith.andi %284, %290 : vector<16x128xi1>
    %cst_191 = arith.constant 0.000000e+00 : f32
    %292 = vector.broadcast %cst_191 : f32 to vector<16x128xf32>
    %293 = arith.select %291, %292, %279 : vector<16x128xi1>, vector<16x128xf32>
    %cst_192 = arith.constant 1.000000e+00 : f32
    %294 = vector.broadcast %cst_192 : f32 to vector<16x128xf32>
    %295 = arith.cmpf oeq, %254, %294 : vector<16x128xf32>
    %cst_193 = arith.constant 5.000000e+00 : f32
    %296 = vector.broadcast %cst_193 : f32 to vector<16x128xf32>
    %297 = arith.cmpf oeq, %254, %296 : vector<16x128xf32>
    %298 = arith.ori %295, %297 : vector<16x128xi1>
    %299 = vector.extract_strided_slice %276 {offsets = [8, 0], sizes = [16, 128], strides = [1, 1]} : vector<32x128xf32> to vector<16x128xf32>
    %300 = arith.cmpf ogt, %279, %299 : vector<16x128xf32>
    %301 = vector.extract_strided_slice %277 {offsets = [8, 0], sizes = [16, 128], strides = [1, 1]} : vector<32x128xf32> to vector<16x128xf32>
    %302 = arith.cmpf ogt, %279, %301 : vector<16x128xf32>
    %303 = arith.andi %300, %302 : vector<16x128xi1>
    %cst_194 = arith.constant dense<true> : vector<16x128xi1>
    %304 = arith.xori %303, %cst_194 : vector<16x128xi1>
    %305 = arith.andi %298, %304 : vector<16x128xi1>
    %cst_195 = arith.constant 0.000000e+00 : f32
    %306 = vector.broadcast %cst_195 : f32 to vector<16x128xf32>
    %307 = arith.select %305, %306, %293 : vector<16x128xi1>, vector<16x128xf32>
    %cst_196 = arith.constant 2.000000e+00 : f32
    %308 = vector.broadcast %cst_196 : f32 to vector<16x128xf32>
    %309 = arith.cmpf oeq, %254, %308 : vector<16x128xf32>
    %cst_197 = arith.constant 6.000000e+00 : f32
    %310 = vector.broadcast %cst_197 : f32 to vector<16x128xf32>
    %311 = arith.cmpf oeq, %254, %310 : vector<16x128xf32>
    %312 = arith.ori %309, %311 : vector<16x128xi1>
    %313 = vector.extract_strided_slice %271 {offsets = [8, 0], sizes = [16, 128], strides = [1, 1]} : vector<32x128xf32> to vector<16x128xf32>
    %314 = arith.cmpf ogt, %279, %313 : vector<16x128xf32>
    %315 = vector.extract_strided_slice %272 {offsets = [8, 0], sizes = [16, 128], strides = [1, 1]} : vector<32x128xf32> to vector<16x128xf32>
    %316 = arith.cmpf ogt, %279, %315 : vector<16x128xf32>
    %317 = arith.andi %314, %316 : vector<16x128xi1>
    %cst_198 = arith.constant dense<true> : vector<16x128xi1>
    %318 = arith.xori %317, %cst_198 : vector<16x128xi1>
    %319 = arith.andi %312, %318 : vector<16x128xi1>
    %cst_199 = arith.constant 0.000000e+00 : f32
    %320 = vector.broadcast %cst_199 : f32 to vector<16x128xf32>
    %321 = arith.select %319, %320, %307 : vector<16x128xi1>, vector<16x128xf32>
    %cst_200 = arith.constant 3.000000e+00 : f32
    %322 = vector.broadcast %cst_200 : f32 to vector<16x128xf32>
    %323 = arith.cmpf oeq, %254, %322 : vector<16x128xf32>
    %cst_201 = arith.constant 7.000000e+00 : f32
    %324 = vector.broadcast %cst_201 : f32 to vector<16x128xf32>
    %325 = arith.cmpf oeq, %254, %324 : vector<16x128xf32>
    %326 = arith.ori %323, %325 : vector<16x128xi1>
    %327 = vector.extract_strided_slice %275 {offsets = [8, 0], sizes = [16, 128], strides = [1, 1]} : vector<32x128xf32> to vector<16x128xf32>
    %328 = arith.cmpf ogt, %279, %327 : vector<16x128xf32>
    %329 = vector.extract_strided_slice %278 {offsets = [8, 0], sizes = [16, 128], strides = [1, 1]} : vector<32x128xf32> to vector<16x128xf32>
    %330 = arith.cmpf ogt, %279, %329 : vector<16x128xf32>
    %331 = arith.andi %328, %330 : vector<16x128xi1>
    %cst_202 = arith.constant dense<true> : vector<16x128xi1>
    %332 = arith.xori %331, %cst_202 : vector<16x128xi1>
    %333 = arith.andi %326, %332 : vector<16x128xi1>
    %cst_203 = arith.constant 0.000000e+00 : f32
    %334 = vector.broadcast %cst_203 : f32 to vector<16x128xf32>
    %335 = arith.select %333, %334, %321 : vector<16x128xi1>, vector<16x128xf32>
    %c0_204 = arith.constant 0 : index
    %c0_205 = arith.constant 0 : index
    %c0_206 = arith.constant 0 : index
    %c0_207 = arith.constant 0 : index
    %336 = vector.load %arg10[%c0_204, %c0_205, %c0_206, %c0_207] : memref<1x1x16x128xf32, #tpu.memory_space<vmem>>, vector<1x1x16x128xf32>
    %337 = vector.shape_cast %336 : vector<1x1x16x128xf32> to vector<16x128xf32>
    %338 = vector.shape_cast %335 : vector<16x128xf32> to vector<1x1x16x128xf32>
    tpu.vector_store %arg10[%c0_204, %c0_205, %c0_206, %c0_207], %338 {strides = array<i32>} : memref<1x1x16x128xf32, #tpu.memory_space<vmem>>, vector<1x1x16x128xf32>,
    return
  }
  func.func @transform_0(%arg0: i32, %arg1: i32) -> (i32, i32, i32, i32) {
    %c0_i32 = arith.constant 0 : i32
    %c0_i32_0 = arith.constant 0 : i32
    %c0_i32_1 = arith.constant 0 : i32
    return %arg0, %c0_i32, %arg1, %c0_i32_0 : i32, i32, i32, i32
  }
  func.func @transform_1(%arg0: i32, %arg1: i32) -> (i32, i32, i32, i32) {
    %c2_i32 = arith.constant 2 : i32
    %0 = arith.muli %arg1, %c2_i32 : i32
    %c1_i32 = arith.constant 1 : i32
    %1 = arith.subi %0, %c1_i32 : i32
    %c0_i32 = arith.constant 0 : i32
    %2 = arith.maxsi %1, %c0_i32 : i32
    %c0_i32_0 = arith.constant 0 : i32
    %c0_i32_1 = arith.constant 0 : i32
    %c0_i32_2 = arith.constant 0 : i32
    return %arg0, %c0_i32_0, %2, %c0_i32_1 : i32, i32, i32, i32
  }
  func.func @transform_2(%arg0: i32, %arg1: i32) -> (i32, i32, i32, i32) {
    %c1_i32 = arith.constant 1 : i32
    %0 = arith.addi %arg1, %c1_i32 : i32
    %c2_i32 = arith.constant 2 : i32
    %1 = arith.muli %0, %c2_i32 : i32
    %c1_i32_0 = arith.constant 1 : i32
    %2 = arith.minsi %1, %c1_i32_0 : i32
    %c0_i32 = arith.constant 0 : i32
    %c0_i32_1 = arith.constant 0 : i32
    %c0_i32_2 = arith.constant 0 : i32
    return %arg0, %c0_i32, %2, %c0_i32_1 : i32, i32, i32, i32
  }
  func.func @transform_3(%arg0: i32, %arg1: i32) -> (i32, i32, i32, i32) {
    %c0_i32 = arith.constant 0 : i32
    %c0_i32_0 = arith.constant 0 : i32
    %c0_i32_1 = arith.constant 0 : i32
    return %arg0, %c0_i32, %arg1, %c0_i32_0 : i32, i32, i32, i32
  }
  func.func @transform_4(%arg0: i32, %arg1: i32) -> (i32, i32, i32, i32) {
    %c0_i32 = arith.constant 0 : i32
    %c0_i32_0 = arith.constant 0 : i32
    %c0_i32_1 = arith.constant 0 : i32
    return %arg0, %c0_i32, %arg1, %c0_i32_0 : i32, i32, i32, i32
  }
  func.func @transform_5(%arg0: i32, %arg1: i32) -> (i32, i32, i32, i32) {
    %c0_i32 = arith.constant 0 : i32
    %c0_i32_0 = arith.constant 0 : i32
    %c0_i32_1 = arith.constant 0 : i32
    return %arg0, %c0_i32, %arg1, %c0_i32_0 : i32, i32, i32, i32
  }
  func.func @transform_6(%arg0: i32, %arg1: i32) -> (i32, i32, i32, i32) {
    %c0_i32 = arith.constant 0 : i32
    %c0_i32_0 = arith.constant 0 : i32
    %c0_i32_1 = arith.constant 0 : i32
    return %arg0, %c0_i32, %arg1, %c0_i32_0 : i32, i32, i32, i32
  }
  func.func @transform_7(%arg0: i32, %arg1: i32) -> (i32, i32, i32, i32) {
    %c0_i32 = arith.constant 0 : i32
    %c0_i32_0 = arith.constant 0 : i32
    %c0_i32_1 = arith.constant 0 : i32
    return %arg0, %c0_i32, %arg1, %c0_i32_0 : i32, i32, i32, i32
  }
  func.func @transform_8(%arg0: i32, %arg1: i32) -> (i32, i32, i32, i32) {
    %c0_i32 = arith.constant 0 : i32
    %c0_i32_0 = arith.constant 0 : i32
    %c0_i32_1 = arith.constant 0 : i32
    return %arg0, %c0_i32, %arg1, %c0_i32_0 : i32, i32, i32, i32
  }
}

</mosaic_0001>

<bundles_post_ra>
// kernel: canny_filter.1
= control target key start
LH: loop header
LB: loop body
LE: loop exit
PB: predicated region body
PF: predicated region fallthrough
CT: control target
= control target key end

     0   :  { %s2893_s0 = inlined_call_operand.vmem [shape: f32[2,4,16,128], index: 0, kind: input, shape index: {}, may-alias: {0,1,2}]   ;;  %s2894_s1 = inlined_call_operand.vmem [shape: f32[2,4,16,128], index: 1, kind: input, shape index: {}, may-alias: {0,1,2}]   ;;  %s2895_s2 = inlined_call_operand.vmem [shape: f32[2,4,16,128], index: 2, kind: input, shape index: {}, may-alias: {0,1,2}]   ;;  %s2896_s3 = inlined_call_operand.hbm [shape: f32[2,4,16,128], index: 3, kind: output, shape index: {0}]   ;;  %s2897_s4 = inlined_call_operand.hbm [shape: f32[2,1,16,128], index: 4, kind: output, shape index: {1}]   ;;  %s2898_s5 = inlined_call_operand.hbm [shape: f32[2,1,16,128], index: 5, kind: output, shape index: {2}]   ;;  %s2899_s6 = inlined_call_operand.hbm [shape: f32[2,1,16,128], index: 6, kind: output, shape index: {3}]   ;;  %s2900_s7 = inlined_call_operand.hbm [shape: f32[2,1,16,128], index: 7, kind: output, shape index: {4}]   ;;  %s2901_s8 = inlined_call_operand.hbm [shape: f32[2,1,16,128], index: 8, kind: output, shape index: {5}]  }
   0x1   :  { %2915 = sst [smem:[#allocation24_spill]] %s2893_s0 }
   0x2   :  { %2916 = sst [smem:[#allocation25_spill]] %s2894_s1 }
   0x3   :  { %2917 = sst [smem:[#allocation26_spill]] %s2895_s2 }
   0x4   :  { %14 = vsyncpa [#allocation6], 0 }
   0x5   :  { %16 = vsyncpa [#allocation6 + $0x1], 0 }
   0x6   :  { %17 = vsyncpa [#allocation8], 0 }
   0x7   :  { %19 = vsyncpa [#allocation8 + $0x1], 0 }
   0x8   :  { %20 = vsyncpa [#allocation11], 0 }
   0x9   :  { %22 = vsyncpa [#allocation11 + $0x1], 0 }
   0xa   :  { %23 = vsyncpa [#allocation14], 0 }
   0xb   :  { %25 = vsyncpa [#allocation14 + $0x1], 0  ;;  %s2234_s27 = smov 0   ;;  %s2236_s28 = smov 0  }
   0xc   :  { %s2238_s29 = smov 0   ;;  %s2240_s30 = smov 0  }
   0xd   :  { %s2242_s9 = smov 0   ;;  %s2244_s10 = smov 0  }
   0xe LB: > { %2918 = sst [smem:[#allocation19_spill]] %s2165_s28  ;;  %s1757_s11 = sadd.s32 4294967295, %s2181_s10   ;;  %s2181_s10 = sphi %s2244_s10, %s31_s10   ;;  %s2177_s9 = sphi %s2242_s9, %s2968_s9   ;;  %s2173_s30 = sphi %s2240_s30, %s2967_s30   ;;  %s2169_s29 = sphi %s2238_s29, %s2966_s29   ;;  %s2165_s28 = sphi %s2236_s28, %s2965_s28   ;;  %s2161_s27 = sphi %s2234_s27, %s2964_s27  }
   0xf   : > { %2919 = sst [smem:[#allocation20_spill]] %s2169_s29  ;;  %s2902_s12 = sadd.s32 4294967294, %s2181_s10  }
  0x10   : > { %2920 = sst [smem:[#allocation21_spill]] %s2177_s9  ;;  %s43_s13 = sadd.s32 1, %s2177_s9 }
  0x11   : > { %s88_s14 = sadd.s32 1, %s2169_s29  ;;  %p45_p0 = scmp.ge.s32.totalorder %s43_s13, 2 }
  0x12   : > { %p95_p1 = scmp.ne.s32.totalorder %s2169_s29, %s2165_s28  ;;  %p96_p2 = scmp.eq.s32.totalorder %s2181_s10, 0 }
  0x13   : > { %p163_p3 = scmp.eq.s32.totalorder %s1757_s11, 1  ;;  %s2970_s13 = smov (%p45_p0, %s43_s13), 0 }
  0x14   : > { %2921 = sst [smem:[#allocation22_spill]] %s2970_s13  ;;  %p2275_p4 = por %p96_p2, %p95_p1 }
  0x15   : > { %p2279_p5 = por %p163_p3, %p95_p1  ;;  %s83_s17 = ssub.s32 %s2177_s9, %s2970_s13 }
  0x16   : > { %p168_p6 = scmp.ne.s32.totalorder %s2165_s28, %s2161_s27  ;;  %p86_p7 = scmp.eq.s32.totalorder %s83_s17, 0 }
  0x17   : > { %p169_p8 = scmp.eq.s32.totalorder %s2902_s12, 1  ;;  %p1760_p10 = scmp.ge.s32.totalorder %s2181_s10, 2 }
  0x18   : > { %s2290_s18 = scalar_select %p86_p7, %s2169_s29, %s88_s14  }
  0x19   : > { %p2292_p9 = por %p169_p8, %p168_p6  ;;  %325 = sbr.rel (%p1760_p10) target bundleno = 58 (0x3a), region = 16 }
  0x1a   : > { %2924 = sst [smem:[#allocation23_spill]] %s2290_s18 }
  0x1e   : > { %341 = sbr.rel (!%p2275_p4) target bundleno = 44 (0x2c), region = 24  ;;  %s343_s20 = sand.u32 (%p2275_p4), 1, %s2169_s29  }
  0x1f   : > { %s1822_s21 = sshll.u32 (%p2275_p4), %s2177_s9, 6  ;;  %s1761_s22 = sshll.u32 (%p2275_p4), %s343_s20, 5 }
  0x20   : > { %s2926_s1 = sld [smem:[#allocation25_spill]] (%p2275_p4)  ;;  %s345_s26 = scalar_lea.vmem (%p2275_p4), [#allocation3], %s1761_s22 }
  0x26   : > { %s353_s25 = scalar_lea.vmem %s2926_s1, %s1822_s21 }
  0x27   : > { %v388_v0 = vld [vmem:[%s353_s25] sm:$0xff]  ;;  %v390_v1 = vld [vmem:[%s353_s25 + $0x10] sm:$0xff] }
  0x28   : > { %v392_v2 = vld [vmem:[%s353_s25 + $0x20] sm:$0xff]  ;;  %389 = vst [vmem:[%s345_s26] sm:$0xff] %v388_v0  ;;  %v394_v3 = vld [vmem:[%s353_s25 + $0x30] sm:$0xff] }
  0x29   : > { %391 = vst [vmem:[%s345_s26 + $0x8] sm:$0xff] %v390_v1 }
  0x2a   : > { %393 = vst [vmem:[%s345_s26 + $0x10] sm:$0xff] %v392_v2 }
  0x2b   : > { %395 = vst [vmem:[%s345_s26 + $0x18] sm:$0xff] %v394_v3 }
  0x2c PF: > { %401 = sbr.rel (!%p2275_p4) target bundleno = 58 (0x3a), region = 62  ;;  %s403_s14 = sand.u32 (%p2275_p4), 1, %s2169_s29  }
  0x2d   : > { %s1832_s17 = sshll.u32 (%p2275_p4), %s2177_s9, 6  ;;  %s1764_s20 = sshll.u32 (%p2275_p4), %s403_s14, 5 }
  0x2e   : > { %s1824_s23 = sadd.s32 (%p2275_p4), 8, %s1832_s17  ;;  %s2927_s2 = sld [smem:[#allocation26_spill]] (%p2275_p4) }
  0x2f   : > { %s405_s22 = scalar_lea.vmem (%p2275_p4), [#allocation4], %s1764_s20 }
  0x34   : > { %s413_s12 = scalar_lea.vmem %s2927_s2, %s1824_s23 }
  0x35   : > { %v448_v4 = vld [vmem:[%s413_s12] sm:$0xff]  ;;  %v450_v5 = vld [vmem:[%s413_s12 + $0x10] sm:$0xff] }
  0x36   : > { %v452_v6 = vld [vmem:[%s413_s12 + $0x20] sm:$0xff]  ;;  %449 = vst [vmem:[%s405_s22] sm:$0xff] %v448_v4  ;;  %v454_v7 = vld [vmem:[%s413_s12 + $0x30] sm:$0xff] }
  0x37   : > { %451 = vst [vmem:[%s405_s22 + $0x8] sm:$0xff] %v450_v5 }
  0x38   : > { %453 = vst [vmem:[%s405_s22 + $0x10] sm:$0xff] %v452_v6 }
  0x39   : > { %455 = vst [vmem:[%s405_s22 + $0x18] sm:$0xff] %v454_v7 }
  0x3a PF: > { %p1767_p11 = scmp.ge.s32.totalorder %s2181_s10, 1  ;;  %p460_p12 = scmp.lt.s32.totalorder %s2181_s10, 3 }
  0x3c   : > { %p461_p13 = pnand %p1767_p11, %p460_p12 }
  0x3d   : > { %s2316_s15 = sand.u32 (!%p461_p13), 1, %s2165_s28   ;;  %p546_p0 = scmp.lt.s32.totalorder (!%p461_p13), %s2173_s30, 1 }
  0x3e   : > { %464 = sbr.rel (%p461_p13) target bundleno = 575 (0x23f), region = 100  ;;  %s1768_s12 = sshll.u32 (!%p461_p13), %s2316_s15, 5 }
  0x3f   : > { %s2321_s26 = scalar_lea.vmem (!%p461_p13), [#allocation3], %s1768_s12  ;;  %s2328_s17 = scalar_lea.vmem (!%p461_p13), [#allocation4], %s1768_s12 }
  0x40   : > { %s2928_s0 = sld [smem:[#allocation24_spill]] (!%p461_p13)  ;;  %s2906_s24 = smov (!%p461_p13), 127  }
  0x41   : > { %s2903_s22 = smov (!%p461_p13), 1   ;;  %s1770_s12 = sshll.u32 (!%p461_p13), %s2316_s15, 6 }
  0x43   : > { %v597_v8 = vlaneseq  ;;  %s547_s25 = scalar_select %p546_p0, %s2173_s30, 1  ;;  %v573_v9 = vld [vmem:[%s2321_s26] sm:$0xff]  ;;  %v1778_v11 = vld [vmem:[%s2321_s26 + $0x8] sm:$0xff]  ;;  %v1784_v43 = vld [vmem:[%s2321_s26 + $0x10] sm:$0xff] }
  0x44   : > { %v575_v12 = vmul.f32 0.0, %v573_v9  ;;  %v581_v13 = vld [vmem:[%s2328_s17] sm:$0xff]  ;;  %v665_v14 = vmul.f32 0.0, %v1778_v11  ;;  %v1781_v17 = vld [vmem:[%s2328_s17 + $0x8] sm:$0xff]  ;;  %v1787_v46 = vld [vmem:[%s2328_s17 + $0x10] sm:$0xff]  ;;  %v753_v49 = vmul.f32 0.0, %v1784_v43 }
  0x45   : > { %v2325_v10 = vshrl.u32 %v597_v8, 7  ;;  %s1825_s14 = sshll.u32 %s547_s25, 6  ;;  %v583_v16 = vmul.f32 0.0, %v581_v13  ;;  %v674_v27 = vmul.f32 0.0, %v1781_v17  ;;  %v762_v57 = vmul.f32 0.0, %v1787_v46  ;;  %v1790_v3 = vld [vmem:[%s2321_s26 + $0x18] sm:$0xff] }
  0x46   : > { %s2334_s21 = scalar_lea.vmem %s2928_s0, %s1825_s14  ;;  %v593_v15 = vrot.slane %v575_v12, 7  ;;  %v684_v28 = vrot.slane %v665_v14, 7  ;;  %v772_v60 = vrot.slane %v753_v49, 7  ;;  %v1793_v4 = vld [vmem:[%s2328_s17 + $0x18] sm:$0xff]  ;;  %v841_v11 = vmul.f32 0.0, %v1790_v3  ;;  %s2417_s25 = scalar_lea.vmem [#allocation5], %s1770_s12 }
  0x47   : > { %v577_v18 = vld [vmem:[%s2334_s21] sm:$0xff]  ;;  %v578_v19 = vld [vmem:[%s2334_s21 + $0x8] sm:$0xff]  ;;  %vm599_vm0 = vcmp.lt.s32.totalorder %v2325_v10, 1  ;;  %vm608_vm1 = vcmp.lt.s32.totalorder %v2325_v10, 7  ;;  %v1779_v20 = vld [vmem:[%s2334_s21 + $0x10] sm:$0xff]  ;;  %v607_v26 = vrot.slane %v583_v16, 1 }
  0x48   : > { %v594_v21 = vrot.slane %v577_v18, 7  ;;  %v605_v22 = vrot.slane %v577_v18, 1  ;;  %v606_v23 = vrot.slane %v578_v19, 1  ;;  %v1780_v24 = vld [vmem:[%s2334_s21 + $0x18] sm:$0xff]  ;;  %v595_v25 = vrot.slane %v578_v19, 7  ;;  %v1785_v55 = vld [vmem:[%s2334_s21 + $0x20] sm:$0xff] }
  0x49   : > { %v590_v29 = vmul.f32 0.45186275, %v577_v18  ;;  %v685_v32 = vrot.slane %v1779_v20, 7  ;;  %v694_v36 = vrot.slane %v1780_v24, 1  ;;  %v686_v38 = vrot.slane %v1780_v24, 7  ;;  %v1786_v56 = vld [vmem:[%s2334_s21 + $0x28] sm:$0xff] }
  0x4a   : > { %v602_v30 = vsel %vm599_vm0, %v593_v15, %v594_v21  ;;  %v610_v31 = vsel %vm608_vm1, %v605_v22, %v606_v23  ;;  %v601_v34 = vsel %vm599_vm0, %v594_v21, %v595_v25  ;;  %v609_v35 = vsel %vm608_vm1, %v606_v23, %v607_v26  ;;  %v1791_v14 = vld [vmem:[%s2334_s21 + $0x30] sm:$0xff]  ;;  %v1792_v16 = vld [vmem:[%s2334_s21 + $0x38] sm:$0xff]  ;;  %s2463_s26 = sshll.u32 %s2316_s15, 4  ;;  %s2599_s21 = sand.u32 1, %s1757_s11  }
  0x4b   : > { %v614_v33 = vadd.f32 %v610_v31, %v602_v30  ;;  %v615_v37 = vadd.f32 %v609_v35, %v601_v34  ;;  %v695_v40 = vrot.slane %v674_v27, 1  ;;  %v690_v41 = vsel %vm599_vm0, %v684_v28, %v685_v32  ;;  %s2466_s14 = scalar_lea.vmem [#allocation7], %s2463_s26  ;;  %s2471_s17 = scalar_lea.vmem [#allocation9], %s2463_s26 }
  0x4c   : > { %v693_v42 = vrot.slane %v1779_v20, 1  ;;  %v681_v47 = vmul.f32 0.45186275, %v1779_v20  ;;  %v591_v50 = vmul.f32 0.45186275, %v578_v19  ;;  %v689_v52 = vsel %vm599_vm0, %v685_v32, %v686_v38  ;;  %s2514_s20 = scalar_lea.vmem [#allocation10], %s2463_s26 }
  0x4d   : > { %v618_v39 = vmul.f32 0.27406862, %v614_v33  ;;  %v619_v51 = vmul.f32 0.27406862, %v615_v37  ;;  %v696_v53 = vsel %vm608_vm1, %v694_v36, %v695_v40  ;;  %v773_v62 = vrot.slane %v1785_v55, 7  ;;  %s1404_s23 = sshll.u32 %s2471_s17, 4  ;;  %s2590_s23 = int_to_ptr.vmem [resolvable:$true] %s1404_s23 }
  0x4e   : > { %v697_v45 = vsel %vm608_vm1, %v693_v42, %v694_v36  ;;  %v702_v58 = vadd.f32 %v696_v53, %v689_v52  ;;  %v781_v63 = vrot.slane %v1785_v55, 1  ;;  %v782_v0 = vrot.slane %v1786_v56, 1  ;;  %s2602_s12 = sshll.u32 %s2173_s30, 4 }
  0x4f   : > { %v2354_v44 = vadd.f32 %v618_v39, %v590_v29  ;;  %v701_v48 = vadd.f32 %v697_v45, %v690_v41  ;;  %v2371_v61 = vadd.f32 %v619_v51, %v591_v50  ;;  %v774_v1 = vrot.slane %v1786_v56, 7  ;;  %s1384_s1 = scalar_lea.hbm %s2897_s4, %s2602_s12  ;;  %s1422_s9 = scalar_lea.hbm %s2899_s6, %s2602_s12 }
  0x50   : > { %v783_v2 = vrot.slane %v762_v57, 1  ;;  %v682_v5 = vmul.f32 0.45186275, %v1780_v24  ;;  %v706_v6 = vmul.f32 0.27406862, %v702_v58  ;;  %v778_v7 = vsel %vm599_vm0, %v772_v60, %v773_v62  ;;  %s1387_s11 = sshll.u32 %s1384_s1, 4  ;;  %s1388_s11 = int_to_ptr.hbm [resolvable:$true] %s1387_s11 }
  0x51   : > { %639 = vrot.lane.b32.xlu1 %v2354_v44, %s2906_s24  ;;  %631 = vrot.lane.b32.xlu0 %v2354_v44, %s2903_s22  ;;  %v705_v54 = vmul.f32 0.27406862, %v701_v48  ;;  %v785_v9 = vsel %vm608_vm1, %v781_v63, %v782_v0  ;;  %v777_v12 = vsel %vm599_vm0, %v773_v62, %v774_v1  ;;  %v850_v15 = vmul.f32 0.0, %v1793_v4  ;;  %s1965_s18 = sshra.s32 %s1388_s11, 4  ;;  %s1971_s1 = scalar_lea.hbm %s2897_s4, 32  ;;  %s1966_s18 = int_to_ptr.hbm [resolvable:$true] %s1965_s18 }
  0x52   : > { %v784_v13 = vsel %vm608_vm1, %v782_v0, %v783_v2  ;;  %v710_v17 = vadd.f32 %v706_v6, %v682_v5  ;;  %v789_v18 = vadd.f32 %v785_v9, %v778_v7  ;;  %v860_v20 = vrot.slane %v841_v11, 7  ;;  %p1972_p4 = scmp.lt.s32.totalorder %s1966_s18, %s2897_s4 }
  0x53   : > { %v2369_v59 = vadd.f32 %v705_v54, %v681_v47  ;;  %v790_v19 = vadd.f32 %v784_v13, %v777_v12  ;;  %v861_v21 = vrot.slane %v1791_v14, 7  ;;  %v869_v22 = vrot.slane %v1791_v14, 1 }
  0x54   : > { %v870_v23 = vrot.slane %v1792_v16, 1  ;;  %v862_v24 = vrot.slane %v1792_v16, 7  ;;  %v871_v25 = vrot.slane %v850_v15, 1  ;;  %v769_v26 = vmul.f32 0.45186275, %v1785_v55 }
  0x55   : > { %718 = vrot.lane.b32.xlu2 %v2369_v59, %s2903_s22  ;;  %v793_v27 = vmul.f32 0.27406862, %v789_v18  ;;  %v770_v28 = vmul.f32 0.45186275, %v1786_v56  ;;  %v794_v29 = vmul.f32 0.27406862, %v790_v19  ;;  %v866_v30 = vsel %vm599_vm0, %v860_v20, %v861_v21 }
  0x56   : > { %v873_v31 = vsel %vm608_vm1, %v869_v22, %v870_v23  ;;  %v865_v32 = vsel %vm599_vm0, %v861_v21, %v862_v24  ;;  %v872_v33 = vsel %vm608_vm1, %v870_v23, %v871_v25  ;;  %v857_v38 = vmul.f32 0.45186275, %v1791_v14 }
  0x57   : > { %v797_v34 = vadd.f32 %v793_v27, %v769_v26  ;;  %v798_v35 = vadd.f32 %v794_v29, %v770_v28  ;;  %v877_v36 = vadd.f32 %v873_v31, %v866_v30  ;;  %v878_v37 = vadd.f32 %v872_v33, %v865_v32 }
  0x58   : > { %v858_v40 = vmul.f32 0.45186275, %v1792_v16  ;;  %v626_v49 = vmul.f32 0.45186275, %v2354_v44  ;;  %v627_v55 = vmul.f32 0.45186275, %v2371_v61 }
  0x59   : > { %641 = vrot.lane.b32.xlu1 %v2371_v61, %s2906_s24  ;;  %633 = vrot.lane.b32.xlu0 %v2371_v61, %s2903_s22  ;;  %v881_v39 = vmul.f32 0.27406862, %v877_v36  ;;  %v882_v41 = vmul.f32 0.27406862, %v878_v37  ;;  %v714_v63 = vmul.f32 0.45186275, %v710_v17 }
  0x5a   : > { %v713_v1 = vmul.f32 0.45186275, %v2369_v59  ;;  %v801_v11 = vmul.f32 0.45186275, %v797_v34  ;;  %v802_v13 = vmul.f32 0.45186275, %v798_v35 }
  0x5b   : > { %v885_v42 = vadd.f32 %v881_v39, %v857_v38  ;;  %v2406_v43 = vadd.f32 %v882_v41, %v858_v40  ;;  %v2428_v25 = vand.u32 127, %v597_v8  ;;  %v2185_v38 = vmov 0.0  }
  0x5c   : > { %v2437_v39 = vrot.slane %v2185_v38, 7  ;;  %v2440_v40 = vrot.slane %v2185_v38, 1 }
  0x5d   : > { %720 = vrot.lane.b32.xlu2 %v710_v17, %s2903_s22  ;;  %v889_v20 = vmul.f32 0.45186275, %v885_v42  ;;  %v890_v30 = vmul.f32 0.45186275, %v2406_v43  ;;  %vm951_vm2 = vcmp.lt.s32.totalorder %v2428_v25, 16 }
  0x61   : > { %728 = vrot.lane.b32.xlu1 %v710_v17, %s2906_s24  ;;  %726 = vrot.lane.b32.xlu0 %v2369_v59, %s2906_s24 }
  0x65   : > { %806 = vrot.lane.b32.xlu2 %v797_v34, %s2903_s22 }
  0x69   : > { %814 = vrot.lane.b32.xlu1 %v797_v34, %s2906_s24  ;;  %808 = vrot.lane.b32.xlu0 %v798_v35, %s2903_s22 }
  0x6d   : > { %816 = vrot.lane.b32.xlu2 %v798_v35, %s2906_s24 }
  0x71   : > { %894 = vrot.lane.b32.xlu0 %v885_v42, %s2903_s22  ;;  %896 = vrot.lane.b32.xlu1 %v2406_v43, %s2903_s22 }
  0x75   : > { %902 = vrot.lane.b32.xlu2 %v885_v42, %s2906_s24 }
  0x79   : > { %904 = vrot.lane.b32.xlu0 %v2406_v43, %s2906_s24 }
  0xaf   : > { %v719_v45 = vpop.permute.xlu2 %718 }
  0xb7   : > { %v721_v46 = vpop.permute.xlu2 %720 }
  0xbf   : > { %v807_v57 = vpop.permute.xlu2 %806 }
  0xc3   : > { %v640_v47 = vpop.permute.xlu1 %639  ;;  %v632_v48 = vpop.permute.xlu0 %631 }
  0xc4   : > { %v646_v50 = vadd.f32 %v640_v47, %v632_v48 }
  0xc6   : > { %v650_v51 = vmul.f32 0.27406862, %v646_v50 }
  0xc7   : > { %v817_v5 = vpop.permute.xlu2 %816 }
  0xc8   : > { %v654_v52 = vadd.f32 %v650_v51, %v626_v49 }
  0xca   : > { %657 = vst [vmem:[%s2417_s25] sm:$0xff] %v654_v52 }
  0xcb   : > { %v642_v53 = vpop.permute.xlu1 %641  ;;  %v634_v54 = vpop.permute.xlu0 %633 }
  0xcc   : > { %v647_v56 = vadd.f32 %v642_v53, %v634_v54 }
  0xce   : > { %v651_v58 = vmul.f32 0.27406862, %v647_v56 }
  0xcf   : > { %v903_v18 = vpop.permute.xlu2 %902 }
  0xd0   : > { %v655_v60 = vadd.f32 %v651_v58, %v627_v55 }
  0xd2   : > { %658 = vst [vmem:[%s2417_s25 + $0x8] sm:$0xff] %v655_v60 }
  0xd3   : > { %v729_v44 = vpop.permute.xlu1 %728  ;;  %v727_v62 = vpop.permute.xlu0 %726 }
  0xd4   : > { %v734_v0 = vadd.f32 %v729_v44, %v721_v46  ;;  %v733_v2 = vadd.f32 %v727_v62, %v719_v45 }
  0xd6   : > { %v738_v3 = vmul.f32 0.27406862, %v734_v0  ;;  %v737_v4 = vmul.f32 0.27406862, %v733_v2 }
  0xd8   : > { %v742_v6 = vadd.f32 %v738_v3, %v714_v63  ;;  %v741_v61 = vadd.f32 %v737_v4, %v713_v1 }
  0xda   : > { %1783 = vst [vmem:[%s2417_s25 + $0x18] sm:$0xff] %v742_v6  ;;  %v748_v23 = vadd.f32 %v741_v61, %v654_v52  ;;  %v749_v32 = vadd.f32 %v742_v6, %v655_v60 }
  0xdb   : > { %1782 = vst [vmem:[%s2417_s25 + $0x10] sm:$0xff] %v741_v61  ;;  %v815_v7 = vpop.permute.xlu1 %814  ;;  %v809_v9 = vpop.permute.xlu0 %808 }
  0xdc   : > { %v821_v12 = vadd.f32 %v815_v7, %v807_v57  ;;  %v822_v14 = vadd.f32 %v817_v5, %v809_v9 }
  0xde   : > { %v825_v15 = vmul.f32 0.27406862, %v821_v12  ;;  %v826_v16 = vmul.f32 0.27406862, %v822_v14 }
  0xe0   : > { %v829_v59 = vadd.f32 %v825_v15, %v801_v11  ;;  %v830_v17 = vadd.f32 %v826_v16, %v802_v13 }
  0xe2   : > { %1788 = vst [vmem:[%s2417_s25 + $0x20] sm:$0xff] %v829_v59  ;;  %v836_v27 = vadd.f32 %v829_v59, %v748_v23  ;;  %v837_v34 = vadd.f32 %v830_v17, %v749_v32 }
  0xe3   : > { %1789 = vst [vmem:[%s2417_s25 + $0x28] sm:$0xff] %v830_v17  ;;  %v895_v19 = vpop.permute.xlu0 %894  ;;  %v897_v26 = vpop.permute.xlu1 %896 }
  0xe4   : > { %v909_v21 = vadd.f32 %v903_v18, %v895_v19 }
  0xe6   : > { %v913_v22 = vmul.f32 0.27406862, %v909_v21 }
  0xe8   : > { %v917_v24 = vadd.f32 %v913_v22, %v889_v20 }
  0xea   : > { %1794 = vst [vmem:[%s2417_s25 + $0x30] sm:$0xff] %v917_v24  ;;  %v924_v29 = vadd.f32 %v917_v24, %v836_v27 }
  0xeb   : > { %v905_v28 = vpop.permute.xlu0 %904 }
  0xec   : > { %v910_v31 = vadd.f32 %v905_v28, %v897_v26  ;;  %v957_v35 = vsel %vm951_vm2, %v924_v29, 0.0 }
  0xed   : > { %v961_v37 = vrot.slane %v957_v35, 7  ;;  %v969_v42 = vrot.slane %v957_v35, 1 }
  0xee   : > { %v914_v33 = vmul.f32 0.27406862, %v910_v31 }
  0xef   : > { %v966_v46 = vsel %vm599_vm0, %v2437_v39, %v961_v37 }
  0xf0   : > { %v918_v36 = vadd.f32 %v914_v33, %v890_v30 }
  0xf2   : > { %1795 = vst [vmem:[%s2417_s25 + $0x38] sm:$0xff] %v918_v36  ;;  %v925_v8 = vadd.f32 %v918_v36, %v837_v34 }
  0xf4   : > { %v958_v41 = vsel %vm951_vm2, %v925_v8, 0.0 }
  0xf5   : > { %v962_v43 = vrot.slane %v958_v41, 7  ;;  %v970_v45 = vrot.slane %v958_v41, 1 }
  0xf7   : > { %v973_v47 = vsel %vm608_vm1, %v969_v42, %v970_v45  ;;  %v965_v48 = vsel %vm599_vm0, %v961_v37, %v962_v43  ;;  %v972_v49 = vsel %vm608_vm1, %v970_v45, %v2440_v40 }
  0xf8   : > { %v1013_v50 = vsub.f32 %v973_v47, %v966_v46  ;;  %v977_v51 = vadd.f32 %v973_v47, %v966_v46  ;;  %v978_v52 = vadd.f32 %v972_v49, %v965_v48  ;;  %v1014_v57 = vsub.f32 %v972_v49, %v965_v48 }
  0xfa   : > { %1018 = vrot.lane.b32.xlu2 %v1013_v50, %s2906_s24  ;;  %v981_v53 = vmul.f32 0.5, %v977_v51  ;;  %v982_v55 = vmul.f32 0.5, %v978_v52 }
  0xfc   : > { %v985_v54 = vadd.f32 %v981_v53, %v957_v35  ;;  %v986_v56 = vadd.f32 %v982_v55, %v958_v41 }
  0xfe   : > { %998 = vrot.lane.b32.xlu0 %v985_v54, %s2903_s22  ;;  %990 = vrot.lane.b32.xlu1 %v985_v54, %s2906_s24 }
 0x102   : > { %992 = vrot.lane.b32.xlu2 %v986_v56, %s2906_s24 }
 0x106   : > { %1020 = vrot.lane.b32.xlu0 %v1014_v57, %s2906_s24  ;;  %1000 = vrot.lane.b32.xlu1 %v986_v56, %s2903_s22 }
 0x10a   : > { %1028 = vrot.lane.b32.xlu2 %v1014_v57, %s2903_s22 }
 0x10e   : > { %1026 = vrot.lane.b32.xlu1 %v1013_v50, %s2903_s22 }
 0x154   : > { %v1019_v58 = vpop.permute.xlu2 %1018 }
 0x15c   : > { %v993_v60 = vpop.permute.xlu2 %992 }
 0x164   : > { %v1029_v1 = vpop.permute.xlu2 %1028 }
 0x170   : > { %v999_v44 = vpop.permute.xlu0 %998  ;;  %v991_v62 = vpop.permute.xlu1 %990 }
 0x171   : > { %v1005_v63 = vsub.f32 %v991_v62, %v999_v44 }
 0x173   : > { %v1009_v0 = vmul.f32 0.25, %v1005_v63 }
 0x175   : > { %1935 = vrcp.f32 %v1009_v0  ;;  %1048 = vst [vmem:[%s2466_s14] sm:$0xff] %v1009_v0  ;;  %v1125_v19 = vand.u32 2147483648, %v1009_v0  ;;  %vm1119_vm4 = vweird.f32 %v1009_v0  ;;  %v1123_v22 = vand.u32 2147483647, %v1009_v0 }
 0x176   : > { %v1053_v35 = vmul.f32 %v1009_v0, %v1009_v0 }
 0x177   : > { %v1126_v29 = vor.u32 1.1754944e-38, %v1125_v19  ;;  %vm1124_vm6 = vcmp.eq.f32.partialorder %v1123_v22, 8.507059e+37 }
 0x178   : > { %v1021_v2 = vpop.permute.xlu0 %1020  ;;  %v1001_v3 = vpop.permute.xlu1 %1000 }
 0x179   : > { %v1034_v4 = vadd.f32 %v1029_v1, %v1021_v2  ;;  %v1006_v5 = vsub.f32 %v993_v60, %v1001_v3 }
 0x17b   : > { %v1936_v6 = vpop.eup %1935  ;;  %v1038_v61 = vmul.f32 0.5, %v1034_v4  ;;  %v1010_v7 = vmul.f32 0.25, %v1006_v5 }
 0x17c   : > { %v1115_v9 = vmul.f32 %v1936_v6, %v1009_v0  ;;  %vm1120_vm3 = vweird.f32 %v1936_v6 }
 0x17d   : > { %v1042_v11 = vadd.f32 %v1038_v61, %v1014_v57  ;;  %1937 = vrcp.f32 %v1010_v7  ;;  %1049 = vst [vmem:[%s2466_s14 + $0x8] sm:$0xff] %v1010_v7  ;;  %v1054_v59 = vmul.f32 %v1010_v7, %v1010_v7  ;;  %vm1121_vm5 = vmor %vm1119_vm4, %vm1120_vm3  ;;  %v1140_v30 = vand.u32 2147483648, %v1010_v7 }
 0x17e   : > { %v1116_v12 = vsub.f32 1.0, %v1115_v9  ;;  %v1138_v33 = vand.u32 2147483647, %v1010_v7  ;;  %vm1134_vm8 = vweird.f32 %v1010_v7 }
 0x17f   : > { %v1046_v13 = vmul.f32 0.25, %v1042_v11  ;;  %v1141_v42 = vor.u32 1.1754944e-38, %v1140_v30 }
 0x180   : > { %v1117_v14 = vmul.f32 %v1936_v6, %v1116_v12  ;;  %v1027_v15 = vpop.permute.xlu1 %1026  ;;  %vm1139_vm10 = vcmp.eq.f32.partialorder %v1138_v33, 8.507059e+37 }
 0x181   : > { %1051 = vst [vmem:[%s2471_s17 + $0x8] sm:$0xff] %v1046_v13  ;;  %v1058_v16 = vmul.f32 %v1046_v13, %v1046_v13  ;;  %v1033_v17 = vadd.f32 %v1027_v15, %v1019_v58 }
 0x182   : > { %v1118_v18 = vadd.f32 %v1936_v6, %v1117_v14 }
 0x183   : > { %v1938_v20 = vpop.eup %1937  ;;  %v2474_v21 = vadd.f32 %v1058_v16, %v1054_v59  ;;  %v1037_v23 = vmul.f32 0.5, %v1033_v17 }
 0x184   : > { %v1130_v24 = vmul.f32 %v1938_v20, %v1010_v7  ;;  %v1122_v26 = vsel %vm1121_vm5, %v1936_v6, %v1118_v18  ;;  %vm1135_vm7 = vweird.f32 %v1938_v20 }
 0x185   : > { %1939 = vrsqrt.f32 %v2474_v21  ;;  %v1041_v27 = vadd.f32 %v1037_v23, %v1013_v50  ;;  %v1127_v34 = vsel %vm1124_vm6, %v1126_v29, %v1122_v26  ;;  %vm1136_vm9 = vmor %vm1134_vm8, %vm1135_vm7  ;;  %vm1095_vm11 = vcmp.eq.f32.partialorder %v2474_v21, inf }
 0x186   : > { %v1131_v28 = vsub.f32 1.0, %v1130_v24  ;;  %v1098_v1 = vand.u32 2147483648, %v2474_v21  ;;  %vm1097_vm12 = vcmp.eq.f32.partialorder %v2474_v21, 0.0 }
 0x187   : > { %v1045_v31 = vmul.f32 0.25, %v1041_v27 }
 0x188   : > { %v1132_v32 = vmul.f32 %v1938_v20, %v1131_v28 }
 0x189   : > { %1050 = vst [vmem:[%s2471_s17] sm:$0xff] %v1045_v31  ;;  %v1057_v36 = vmul.f32 %v1045_v31, %v1045_v31  ;;  %v2478_v8 = vmul.f32 %v1127_v34, %v1045_v31  ;;  %s1385_s17 = sshll.u32 %s2466_s14, 4  ;;  %s1332_s14 = scalar_lea.sflag [#allocation8], %s2599_s21  ;;  %s1386_s17 = int_to_ptr.vmem [resolvable:$true] %s1385_s17 }
 0x18a   : > { %v1133_v37 = vadd.f32 %v1938_v20, %v1132_v32 }
 0x18b   : > { %v1940_v41 = vpop.eup %1939  ;;  %v2480_v43 = vadd.f32 %v1057_v36, %v1053_v35  ;;  %v2483_v45 = vand.u32 2147483647, %v2478_v8 }
 0x18c   : > { %v1089_v46 = vmul.f32 %v1940_v41, %v2474_v21  ;;  %v1137_v47 = vsel %vm1136_vm9, %v1938_v20, %v1133_v37 }
 0x18d   : > { %v1142_v48 = vsel %vm1139_vm10, %v1141_v42, %v1137_v47  ;;  %1941 = vrsqrt.f32 %v2480_v43  ;;  %v1160_v51 = vadd.f32 1.0, %v2483_v45  ;;  %v1796_v62 = vadd.f32 -1.0, %v2483_v45 }
 0x18e   : > { %v1090_v49 = vmul.f32 %v1940_v41, %v1089_v46  ;;  %v2487_v50 = vmul.f32 %v1142_v48, %v1046_v13  ;;  %1943 = vrcp.f32 %v2483_v45  ;;  %vm1148_vm13 = vcmp.gt.f32.partialorder %v2483_v45, 0.41421357 }
 0x18f   : > { %1945 = vrcp.f32 %v1160_v51  ;;  %vm1146_vm14 = vcmp.gt.f32.partialorder %v2483_v45, 2.4142137  ;;  %vm1083_vm4 = vcmp.eq.f32.partialorder %v2480_v43, inf  ;;  %v1086_v23 = vand.u32 2147483648, %v2480_v43 }
 0x190   : > { %v2491_v52 = vand.u32 2147483647, %v2487_v50  ;;  %v1091_v53 = vmul.f32 0.5, %v1090_v49  ;;  %vm1085_vm5 = vcmp.eq.f32.partialorder %v2480_v43, 0.0  ;;  %vm1193_vm10 = vcmp.lt.f32.partialorder %v2487_v50, 0.0 }
 0x192   : > { %v1161_v54 = vadd.f32 1.0, %v2491_v52  ;;  %v1092_v55 = vsub.f32 1.5, %v1091_v53  ;;  %1947 = vrcp.f32 %v2491_v52  ;;  %v1797_v7 = vadd.f32 -1.0, %v2491_v52 }
 0x193   : > { %v1942_v56 = vpop.eup %1941  ;;  %vm1149_vm15 = vcmp.gt.f32.partialorder %v2491_v52, 0.41421357  ;;  %vm1147_vm3 = vcmp.gt.f32.partialorder %v2491_v52, 2.4142137  ;;  %v1150_v53 = vsel %vm1148_vm13, 0.7853982, %v2185_v38 }
 0x194   : > { %1949 = vrcp.f32 %v1161_v54  ;;  %v1077_v57 = vmul.f32 %v1942_v56, %v2480_v43  ;;  %v1093_v58 = vmul.f32 %v1940_v41, %v1092_v55  ;;  %v1944_v60 = vpop.eup %1943 }
 0x195   : > { %v1946_v0 = vpop.eup %1945  ;;  %v1156_v6 = vsub.f32 0.0, %v1944_v60 }
 0x196   : > { %v1078_v44 = vmul.f32 %v1942_v56, %v1077_v57  ;;  %v1094_v63 = vmul.f32 %v1093_v58, %v2474_v21  ;;  %v1164_v3 = vmul.f32 %v1946_v0, %v1796_v62  ;;  %v1152_v57 = vsel %vm1146_vm14, 1.5707964, %v1150_v53 }
 0x197   : > { %v1151_v58 = vsel %vm1149_vm15, 0.7853982, %v2185_v38 }
 0x198   : > { %v1079_v2 = vmul.f32 0.5, %v1078_v44  ;;  %v1096_v4 = vsel %vm1095_vm11, %v2474_v21, %v1094_v63  ;;  %v1948_v5 = vpop.eup %1947  ;;  %v1166_v12 = vsel %vm1148_vm13, %v1164_v3, %v2483_v45  ;;  %v1153_v0 = vsel %vm1147_vm3, 1.5707964, %v1151_v58 }
 0x199   : > { %v1099_v61 = vsel %vm1097_vm12, %v1098_v1, %v1096_v4  ;;  %v1168_v14 = vsel %vm1146_vm14, %v1156_v6, %v1166_v12  ;;  %v1157_v17 = vsub.f32 0.0, %v1948_v5 }
 0x19a   : > { %v1950_v9 = vpop.eup %1949  ;;  %v1080_v11 = vsub.f32 1.5, %v1079_v2  ;;  %v2511_v13 = vsel %vm951_vm2, %v1099_v61, 0.0  ;;  %1113 = vst [vmem:[%s2514_s20 + $0x8] sm:$0xff] %v1099_v61  ;;  %v1170_v59 = vmul.f32 %v1168_v14, %v1168_v14 }
 0x19b   : > { %1230 = vrot.lane.b32.xlu1 %v2511_v13, %s2903_s22  ;;  %v1165_v15 = vmul.f32 %v1950_v9, %v1797_v7  ;;  %v1224_v18 = vrot.slane %v2511_v13, 1  ;;  %v1220_v34 = vrot.slane %v2511_v13, 7 }
 0x19c   : > { %v1081_v16 = vmul.f32 %v1942_v56, %v1080_v11  ;;  %v1172_v21 = vmul.f32 0.080537446, %v1170_v59 }
 0x19d   : > { %v1167_v19 = vsel %vm1149_vm15, %v1165_v15, %v2491_v52  ;;  %v2537_v29 = vsel %vm608_vm1, %v1224_v18, %v2440_v40 }
 0x19e   : > { %v1082_v20 = vmul.f32 %v1081_v16, %v2480_v43  ;;  %v1169_v22 = vsel %vm1147_vm3, %v1157_v17, %v1167_v19  ;;  %v1798_v27 = vadd.f32 -0.13877685, %v1172_v21  ;;  %vm1297_vm6 = vcmp.gt.f32.partialorder %v2511_v13, %v2537_v29 }
 0x19f   : > { %v1171_v24 = vmul.f32 %v1169_v22, %v1169_v22 }
 0x1a0   : > { %v1084_v26 = vsel %vm1083_vm4, %v2480_v43, %v1082_v20  ;;  %v1176_v31 = vmul.f32 %v1798_v27, %v1170_v59 }
 0x1a1   : > { %v1087_v28 = vsel %vm1085_vm5, %v1086_v23, %v1084_v26  ;;  %v1173_v30 = vmul.f32 0.080537446, %v1171_v24 }
 0x1a2   : > { %v2541_v32 = vsel %vm951_vm2, %v1087_v28, 0.0  ;;  %1112 = vst [vmem:[%s2514_s20] sm:$0xff] %v1087_v28  ;;  %v1178_v36 = vadd.f32 0.19977711, %v1176_v31 }
 0x1a3   : > { %1228 = vrot.lane.b32.xlu0 %v2541_v32, %s2903_s22  ;;  %1232 = vrot.lane.b32.xlu2 %v2541_v32, %s2906_s24  ;;  %v1219_v33 = vrot.slane %v2541_v32, 7  ;;  %v1223_v40 = vrot.slane %v2541_v32, 1  ;;  %v1799_v35 = vadd.f32 -0.13877685, %v1173_v30 }
 0x1a4   : > { %v1180_v43 = vmul.f32 %v1178_v36, %v1170_v59 }
 0x1a5   : > { %v1222_v25 = vsel %vm599_vm0, %v2437_v39, %v1219_v33  ;;  %v2558_v37 = vsel %vm599_vm0, %v1219_v33, %v1220_v34  ;;  %v1227_v41 = vsel %vm608_vm1, %v1223_v40, %v1224_v18  ;;  %v1177_v42 = vmul.f32 %v1799_v35, %v1171_v24 }
 0x1a6   : > { %vm1294_vm2 = vcmp.gt.f32.partialorder %v2541_v32, %v1222_v25  ;;  %1240 = vrot.lane.b32.xlu1 %v1222_v25, %s2906_s24  ;;  %vm1295_vm7 = vcmp.gt.f32.partialorder %v2511_v13, %v2558_v37  ;;  %vm1296_vm8 = vcmp.gt.f32.partialorder %v2541_v32, %v1227_v41  ;;  %v1800_v47 = vadd.f32 -0.3333295, %v1180_v43 }
 0x1a7   : > { %vm2567_vm9 = vmand %vm1295_vm7, %vm1297_vm6  ;;  %v1179_v46 = vadd.f32 0.19977711, %v1177_v42  ;;  %vm1192_vm1 = vcmp.lt.f32.partialorder %v2478_v8, 0.0 }
 0x1a8   : > { %vm2571_vm0 = vmand %vm1294_vm2, %vm1296_vm8  ;;  %v1184_v49 = vmul.f32 %v1800_v47, %v1170_v59 }
 0x1a9   : > { %v1181_v48 = vmul.f32 %v1179_v46, %v1171_v24 }
 0x1aa   : > { %v1186_v54 = vmul.f32 %v1184_v49, %v1168_v14 }
 0x1ab   : > { %1234 = vrot.lane.b32.xlu0 %v2511_v13, %s2906_s24  ;;  %1242 = vrot.lane.b32.xlu2 %v2558_v37, %s2906_s24  ;;  %v1801_v51 = vadd.f32 -0.3333295, %v1181_v48 }
 0x1ac   : > { %v1188_v56 = vadd.f32 %v1186_v54, %v1168_v14 }
 0x1ad   : > { %v1185_v55 = vmul.f32 %v1801_v51, %v1171_v24 }
 0x1ae   : > { %1246 = vrot.lane.b32.xlu1 %v2537_v29, %s2903_s22  ;;  %v1190_v44 = vadd.f32 %v1188_v56, %v1152_v57 }
 0x1af   : > { %v1187_v60 = vmul.f32 %v1185_v55, %v1169_v22 }
 0x1b0   : > { %v1194_v63 = vsub.f32 0.0, %v1190_v44 }
 0x1b1   : > { %v1189_v62 = vadd.f32 %v1187_v60, %v1169_v22 }
 0x1b2   : > { %v1196_v38 = vsel %vm1192_vm1, %v1194_v63, %v1190_v44 }
 0x1b3   : > { %1244 = vrot.lane.b32.xlu0 %v1227_v41, %s2903_s22  ;;  %1236 = vrot.lane.b32.xlu2 %v1222_v25, %s2903_s22  ;;  %v1191_v45 = vadd.f32 %v1189_v62, %v1153_v0  ;;  %v1198_v1 = vmul.f32 114.59156, %v1196_v38 }
 0x1b5   : > { %v1195_v2 = vsub.f32 0.0, %v1191_v45  ;;  %v1200_v8 = vadd.f32 180.0, %v1198_v1 }
 0x1b6   : > { %1248 = vrot.lane.b32.xlu1 %v1227_v41, %s2906_s24  ;;  %s1967_s24 = scalar_lea.hbm %s1966_s18, 16 }
 0x1b7   : > { %v1197_v52 = vsel %vm1193_vm10, %v1195_v2, %v1191_v45  ;;  %v2615_v4 = vmul.f32 0.022222223, %v1200_v8  ;;  %p1968_p1 = scmp.ne.s32.totalorder %s1966_s18, %s1967_s24  ;;  %p1973_p6 = scmp.lt.s32.totalorder %s1971_s1, %s1967_s24 }
 0x1b8   : > { %v1199_v3 = vmul.f32 114.59156, %v1197_v52 }
 0x1b9   : > { %p1969_p2 = pnand %p1968_p1, %p2279_p5  ;;  %p1974_p7 = por %p1973_p6, %p1972_p4 }
 0x1bb   : > { %p1970_p3 = pneg %p1969_p2 }
 0x1bd   : > { %p1975_p8 = pnand %p1974_p7, %p1970_p3 }
 0x1bf   : > { %1978 = shalt.err (!%p1975_p8)
}
 0x1c0   : > { %s2186_s2 = smov 128   ;;  %s2187_s13 = smov 8   ;;  %v1201_v50 = vadd.f32 180.0, %v1199_v3  ;;  %v1835_v5 = vcvt.f32.s32 %v2615_v4 }
 0x1c1   : > { %1850 = dma.vmem_to_hbm [thread:$0]  (%p2279_p5), %s1386_s17, 256, %s1388_s11, %s1332_s14, %s2186_s2, %s2186_s2, %s2187_s13  }
 0x1c2   : > { %s1423_s28 = sshll.u32 %s2514_s20, 4  ;;  %s1425_s29 = sshll.u32 %s1422_s9, 4  ;;  %v2639_v6 = vmul.f32 0.022222223, %v1201_v50  ;;  %s1424_s28 = int_to_ptr.vmem [resolvable:$true] %s1423_s28  ;;  %s1426_s29 = int_to_ptr.hbm [resolvable:$true] %s1425_s29 }
 0x1c3   : > { %s2933_s18 = smov 1   ;;  %s2934_s24 = smov 127  }
 0x1c4   : > { %1238 = vrot.lane.b32.xlu0 %v2558_v37, %s2933_s18  ;;  %1250 = vrot.lane.b32.xlu2 %v2537_v29, %s2934_s24  ;;  %s1342_s0 = scalar_lea.sflag [#allocation11], %s2599_s21  ;;  %s1993_s22 = sshra.s32 %s1426_s29, 4  ;;  %s1994_s22 = int_to_ptr.hbm [resolvable:$true] %s1993_s22 }
 0x1c5   : > { %s1995_s1 = scalar_lea.hbm %s1994_s22, 16  ;;  %s1999_s17 = scalar_lea.hbm %s2899_s6, 32 }
 0x1c6   : > { %p1996_p11 = scmp.ne.s32.totalorder %s1994_s22, %s1995_s1  ;;  %p2000_p0 = scmp.lt.s32.totalorder %s1994_s22, %s2899_s6 }
 0x1c7   : > { %p2001_p1 = scmp.lt.s32.totalorder %s1999_s17, %s1995_s1 }
 0x1c8   : > { %p1997_p12 = pnand %p1996_p11, %p2279_p5 }
 0x1c9   : > { %p2002_p2 = por %p2001_p1, %p2000_p0 }
 0x1ca   : > { %p1998_p13 = pneg %p1997_p12 }
 0x1cc   : > { %p2003_p3 = pnand %p2002_p2, %p1998_p13 }
 0x1ce   : > { %2006 = shalt.err (!%p2003_p3)
}
 0x1cf   : > { %1852 = dma.vmem_to_hbm [thread:$0]  (%p2279_p5), %s1424_s28, 256, %s1426_s29, %s1342_s0, %s2186_s2, %s2186_s2, %s2187_s13   ;;  %v1836_v61 = vcvt.s32.f32 %v1835_v5  ;;  %v1833_v7 = vand.u32 2147483647, %v2615_v4  ;;  %v1843_v9 = vcvt.f32.s32 %v2639_v6  ;;  %v1838_v12 = vand.u32 2147483648, %v2615_v4 }
 0x1d0   : > { %s1826_s24 = sshll.u32 %s2173_s30, 6  ;;  %s1366_s9 = sshll.u32 %s2417_s25, 4  ;;  %v1841_v16 = vand.u32 2147483647, %v2639_v6  ;;  %s1367_s9 = int_to_ptr.vmem [resolvable:$true] %s1366_s9 }
 0x1d1   : > { %s1365_s20 = scalar_lea.hbm %s2896_s3, %s1826_s24  ;;  %v1837_v11 = vand.u32 2147483647, %v1836_v61  ;;  %s1403_s29 = scalar_lea.hbm %s2898_s5, %s2602_s12  ;;  %v1844_v14 = vcvt.s32.f32 %v1843_v9 }
 0x1d2   : > { %s1368_s17 = sshll.u32 %s1365_s20, 4  ;;  %s2669_s30 = sshll.u32 %s1403_s29, 4  ;;  %s1369_s17 = int_to_ptr.hbm [resolvable:$true] %s1368_s17  ;;  %s1407_s30 = int_to_ptr.hbm [resolvable:$true] %s2669_s30 }
 0x1d3   : > { %v1839_v15 = vor.u32 %v1838_v12, %v1837_v11  ;;  %s1327_s25 = scalar_lea.sflag [#allocation6], %s2316_s15  ;;  %s2021_s18 = sshra.s32 %s1369_s17, 4  ;;  %s2022_s18 = int_to_ptr.hbm [resolvable:$true] %s2021_s18 }
 0x1d4   : > { %s2023_s24 = scalar_lea.hbm %s2022_s18, 64  ;;  %s2027_s20 = scalar_lea.hbm %s2896_s3, 128 }
 0x1d5   : > { %p2024_p4 = scmp.ne.s32.totalorder %s2022_s18, %s2023_s24  ;;  %p2028_p8 = scmp.lt.s32.totalorder %s2022_s18, %s2896_s3 }
 0x1d6   : > { %p2029_p11 = scmp.lt.s32.totalorder %s2027_s20, %s2023_s24 }
 0x1d7   : > { %p2025_p6 = pnand %p2024_p4, %p2279_p5 }
 0x1d8   : > { %p2030_p12 = por %p2029_p11, %p2028_p8 }
 0x1d9   : > { %p2026_p7 = pneg %p2025_p6 }
 0x1db   : > { %p2031_p13 = pnand %p2030_p12, %p2026_p7 }
 0x1dd   : > { %2034 = shalt.err (!%p2031_p13)
}
 0x1de   : > { %1849 = dma.vmem_to_hbm [thread:$0]  (%p2279_p5), %s1367_s9, 1024, %s1369_s17, %s1327_s25, %s2186_s2, %s2186_s2, %s2187_s13   ;;  %vm1834_vm11 = vcmp.lt.f32.partialorder %v1833_v7, 8388608.0  ;;  %v1845_v59 = vand.u32 2147483647, %v1844_v14  ;;  %v1846_v17 = vand.u32 2147483648, %v2639_v6 }
 0x1df   : > { %s1441_s24 = scalar_lea.hbm %s2900_s7, %s2602_s12  ;;  %v1840_v18 = vsel %vm1834_vm11, %v1839_v15, %v2615_v4  ;;  %s2049_s22 = sshra.s32 %s1407_s30, 4  ;;  %s2050_s22 = int_to_ptr.hbm [resolvable:$true] %s2049_s22 }
 0x1e0   : > { %s2051_s1 = scalar_lea.hbm %s2050_s22, 16  ;;  %s2055_s17 = scalar_lea.hbm %s2898_s5, 32 }
 0x1e1   : > { %p2052_p0 = scmp.ne.s32.totalorder %s2050_s22, %s2051_s1  ;;  %p2056_p3 = scmp.lt.s32.totalorder %s2050_s22, %s2898_s5 }
 0x1e2   : > { %p2057_p4 = scmp.lt.s32.totalorder %s2055_s17, %s2051_s1 }
 0x1e3   : > { %p2053_p1 = pnand %p2052_p0, %p2279_p5 }
 0x1e4   : > { %p2058_p6 = por %p2057_p4, %p2056_p3 }
 0x1e5   : > { %p2054_p2 = pneg %p2053_p1 }
 0x1e7   : > { %p2059_p7 = pnand %p2058_p6, %p2054_p2 }
 0x1e9   : > { %2062 = shalt.err (!%p2059_p7)
}
 0x1ea   : > { %1851 = dma.vmem_to_hbm [thread:$0]  (%p2279_p5), %s2590_s23, 256, %s1407_s30, %s1332_s14, %s2186_s2, %s2186_s2, %s2187_s13   ;;  %vm1210_vm12 = vcmp.eq.f32.partialorder %v1840_v18, 8.0  ;;  %v1847_v19 = vor.u32 %v1846_v17, %v1845_v59  ;;  %v1206_v20 = vmul.f32 45.0, %v1840_v18  ;;  %vm1842_vm13 = vcmp.lt.f32.partialorder %v1841_v16, 8388608.0 }
 0x1eb   : > { %v2709_v21 = vsel %vm1210_vm12, 0.0, %v1840_v18  ;;  %s537_s28 = scalar_lea.vmem [#allocation12], %s2463_s26  ;;  %s2712_s18 = sshll.u32 %s1441_s24, 4  ;;  %v2935_v26 = vmov 0  ;;  %vm2909_vm5 = vmmov 1   ;;  %v2937_v27 = vmov 0  ;;  %s1445_s18 = int_to_ptr.hbm [resolvable:$true] %s2712_s18 }
 0x1ec   : > { %s1442_s29 = sshll.u32 %s537_s28, 4  ;;  %v1848_v22 = vsel %vm1842_vm13, %v1847_v19, %v2639_v6  ;;  %1208 = vst [vmem:[%s537_s28] sm:$0xff] %v1206_v20  ;;  %vm1288_vm15 = vcmp.eq.f32.partialorder %v2709_v21, 2.0  ;;  %vm1290_vm3 = vcmp.eq.f32.partialorder %v2709_v21, 6.0  ;;  %vm2727_vm6 = vmxor %vm2571_vm0, %vm2909_vm5  ;;  %s2077_s23 = sshra.s32 %s1445_s18, 4  ;;  %s1443_s29 = int_to_ptr.vmem [resolvable:$true] %s1442_s29  ;;  %s2078_s23 = int_to_ptr.hbm [resolvable:$true] %s2077_s23 }
 0x1ed   : > { %vm1211_vm14 = vcmp.eq.f32.partialorder %v1848_v22, 8.0  ;;  %v1207_v24 = vmul.f32 45.0, %v1848_v22  ;;  %vm2720_vm4 = vmor %vm1288_vm15, %vm1290_vm3  ;;  %v2938_v27 = vsel %vm2727_vm6, 4294967295, %v2937_v27  ;;  %s2079_s14 = scalar_lea.hbm %s2078_s23, 16  ;;  %s2083_s22 = scalar_lea.hbm %s2900_s7, 32 }
 0x1ee   : > { %v2717_v23 = vsel %vm1211_vm14, 0.0, %v1848_v22  ;;  %v2936_v26 = vsel %vm2720_vm4, 4294967295, %v2935_v26  ;;  %p2080_p8 = scmp.ne.s32.totalorder %s2078_s23, %s2079_s14  ;;  %p2084_p13 = scmp.lt.s32.totalorder %s2078_s23, %s2900_s7 }
 0x1ef   : > { %1209 = vst [vmem:[%s537_s28 + $0x8] sm:$0xff] %v1207_v24  ;;  %vm1289_vm2 = vcmp.eq.f32.partialorder %v2717_v23, 2.0  ;;  %vm1291_vm7 = vcmp.eq.f32.partialorder %v2717_v23, 6.0  ;;  %p2085_p0 = scmp.lt.s32.totalorder %s2083_s22, %s2079_s14 }
 0x1f0   : > { %p2081_p11 = pnand %p2080_p8, %p2279_p5 }
 0x1f1   : > { %p2086_p1 = por %p2085_p0, %p2084_p13 }
 0x1f2   : > { %p2082_p12 = pneg %p2081_p11 }
 0x1f4   : > { %p2087_p2 = pnand %p2086_p1, %p2082_p12 }
 0x1f6   : > { %2090 = shalt.err (!%p2087_p2)
}
 0x1f7   : > { %1853 = dma.vmem_to_hbm [thread:$0]  (%p2279_p5), %s1443_s29, 256, %s1445_s18, %s1342_s0, %s2186_s2, %s2186_s2, %s2187_s13   ;;  %vm2756_vm0 = vmor %vm1289_vm2, %vm1291_vm7  ;;  %v2939_v28 = vmov 0  ;;  %v2941_v29 = vmov 0  ;;  %vm1252_vm12 = vcmp.eq.f32.partialorder %v2709_v21, 0.0  ;;  %vm1253_vm13 = vcmp.eq.f32.partialorder %v2717_v23, 0.0 }
 0x1f8   : > { %v2940_v28 = vsel %vm2756_vm0, 4294967295, %v2939_v28  ;;  %vm2763_vm1 = vmxor %vm2567_vm9, %vm2909_vm5  ;;  %vm1255_vm9 = vcmp.eq.f32.partialorder %v2717_v23, 4.0  ;;  %vm1254_vm15 = vcmp.eq.f32.partialorder %v2709_v21, 4.0  ;;  %vm1271_vm3 = vcmp.eq.f32.partialorder %v2717_v23, 1.0  ;;  %s1460_s9 = scalar_lea.hbm %s2901_s8, %s2602_s12  ;;  %s544_s17 = scalar_lea.vmem [#allocation13], %s2463_s26 }
 0x1f9   : > { %v2942_v29 = vsel %vm2763_vm1, 4294967295, %v2941_v29  ;;  %vm1273_vm2 = vcmp.eq.f32.partialorder %v2717_v23, 5.0  ;;  %vm2779_vm8 = vmor %vm1253_vm13, %vm1255_vm9  ;;  %v2945_v36 = vmov 0  ;;  %vm1270_vm6 = vcmp.eq.f32.partialorder %v2709_v21, 1.0  ;;  %s1461_s25 = sshll.u32 %s544_s17, 4  ;;  %s1463_s11 = sshll.u32 %s1460_s9, 4  ;;  %s1462_s25 = int_to_ptr.vmem [resolvable:$true] %s1461_s25  ;;  %s1464_s11 = int_to_ptr.hbm [resolvable:$true] %s1463_s11 }
 0x1fa   : > { %vm2783_vm10 = vmor %vm1252_vm12, %vm1254_vm15  ;;  %vm1272_vm4 = vcmp.eq.f32.partialorder %v2709_v21, 5.0  ;;  %s1352_s26 = scalar_lea.sflag [#allocation14], %s2316_s15  ;;  %s2105_s12 = sshra.s32 %s1464_s11, 4  ;;  %s2106_s12 = int_to_ptr.hbm [resolvable:$true] %s2105_s12 }
 0x1fb   : > { %v2946_v36 = vsel %vm2783_vm10, 4294967295, %v2945_v36  ;;  %vm2787_vm5 = vmor %vm1271_vm3, %vm1273_vm2  ;;  %vm1306_vm10 = vcmp.eq.f32.partialorder %v2709_v21, 3.0  ;;  %s2107_s28 = scalar_lea.hbm %s2106_s12, 16  ;;  %s2111_s23 = scalar_lea.hbm %s2901_s8, 32 }
 0x1fc   : > { %vm2801_vm15 = vmor %vm1270_vm6, %vm1272_vm4  ;;  %p2108_p3 = scmp.ne.s32.totalorder %s2106_s12, %s2107_s28  ;;  %p2112_p7 = scmp.lt.s32.totalorder %s2106_s12, %s2901_s8 }
 0x1fd   : > { %v1233_v30 = vpop.permute.xlu2 %1232  ;;  %p2113_p8 = scmp.lt.s32.totalorder %s2111_s23, %s2107_s28 }
 0x1fe   : > { %vm1258_vm14 = vcmp.gt.f32.partialorder %v2541_v32, %v1233_v30  ;;  %p2109_p4 = pnand %p2108_p3, %p2279_p5 }
 0x1ff   : > { %p2114_p11 = por %p2113_p8, %p2112_p7 }
 0x200   : > { %p2110_p6 = pneg %p2109_p4 }
 0x202   : > { %p2115_p12 = pnand %p2114_p11, %p2110_p6 }
 0x205   : > { %v1243_v34 = vpop.permute.xlu2 %1242 }
 0x206   : > { %vm1277_vm3 = vcmp.gt.f32.partialorder %v2511_v13, %v1243_v34 }
 0x20d   : > { %v1231_v31 = vpop.permute.xlu1 %1230  ;;  %v1237_v39 = vpop.permute.xlu2 %1236 }
 0x20e   : > { %vm1261_vm1 = vcmp.gt.f32.partialorder %v2511_v13, %v1231_v31 }
 0x215   : > { %v1229_v33 = vpop.permute.xlu0 %1228 }
 0x216   : > { %vm1260_vm11 = vcmp.gt.f32.partialorder %v2541_v32, %v1229_v33 }
 0x217   : > { %vm1262_vm7 = vmand %vm1258_vm14, %vm1260_vm11  ;;  %vm2949_vm11 = vmmov 1  }
 0x218   : > { %v1241_v40 = vpop.permute.xlu1 %1240  ;;  %vm2795_vm13 = vmxor %vm1262_vm7, %vm2949_vm11 }
 0x21d   : > { %v1235_v25 = vpop.permute.xlu0 %1234 }
 0x21e   : > { %vm1259_vm12 = vcmp.gt.f32.partialorder %v2511_v13, %v1235_v25  ;;  %v1251_v55 = vpop.permute.xlu2 %1250 }
 0x21f   : > { %vm1263_vm9 = vmand %vm1259_vm12, %vm1261_vm1  ;;  %vm1308_vm1 = vcmp.eq.f32.partialorder %v2709_v21, 7.0 }
 0x220   : > { %vm1265_vm14 = vmxor %vm1263_vm9, %vm2949_vm11  ;;  %v1247_v42 = vpop.permute.xlu1 %1246 }
 0x221   : > { %vm1267_vm2 = vmand %vm2779_vm8, %vm1265_vm14  ;;  %vm1279_vm7 = vcmp.gt.f32.partialorder %v2511_v13, %v1247_v42  ;;  %vm2956_vm8 = vnez %v2946_v36  ;;  %vm1276_vm14 = vcmp.gt.f32.partialorder %v2541_v32, %v1241_v40 }
 0x222   : > { %vm1281_vm0 = vmand %vm1277_vm3, %vm1279_vm7  ;;  %v1269_v46 = vsel %vm1267_vm2, 0.0, %v2511_v13  ;;  %vm2957_vm3 = vnez %v2940_v28  ;;  %vm2958_vm2 = vnez %v2942_v29 }
 0x223   : > { %vm1283_vm12 = vmxor %vm1281_vm0, %vm2949_vm11 }
 0x224   : > { %vm1285_vm4 = vmand %vm2787_vm5, %vm1283_vm12 }
 0x225   : > { %v1287_v47 = vsel %vm1285_vm4, 0.0, %v1269_v46  ;;  %v1245_v10 = vpop.permute.xlu0 %1244  ;;  %vm2815_vm6 = vmor %vm1306_vm10, %vm1308_vm1  ;;  %vm1312_vm1 = vcmp.gt.f32.partialorder %v2541_v32, %v1237_v39 }
 0x226   : > { %vm1266_vm9 = vmand %vm2956_vm8, %vm2795_vm13  ;;  %vm1278_vm0 = vcmp.gt.f32.partialorder %v2541_v32, %v1245_v10  ;;  %vm2960_vm8 = vnez %v2936_v26 }
 0x227   : > { %vm2959_vm5 = vmand %vm2957_vm3, %vm2958_vm2  ;;  %v1268_v53 = vsel %vm1266_vm9, 0.0, %v2541_v32  ;;  %vm1307_vm2 = vcmp.eq.f32.partialorder %v2717_v23, 3.0  ;;  %vm1309_vm9 = vcmp.eq.f32.partialorder %v2717_v23, 7.0 }
 0x228   : > { %v1305_v49 = vsel %vm2959_vm5, 0.0, %v1287_v47  ;;  %vm1280_vm10 = vmand %vm1276_vm14, %vm1278_vm0  ;;  %v1249_v51 = vpop.permute.xlu1 %1248  ;;  %vm2961_vm14 = vnez %v2938_v27  ;;  %vm1315_vm5 = vcmp.gt.f32.partialorder %v2511_v13, %v1251_v55 }
 0x229   : > { %vm1282_vm7 = vmxor %vm1280_vm10, %vm2949_vm11  ;;  %vm1314_vm12 = vcmp.gt.f32.partialorder %v2541_v32, %v1249_v51 }
 0x22a   : > { %vm1284_vm13 = vmand %vm2801_vm15, %vm1282_vm7 }
 0x22b   : > { %v1286_v54 = vsel %vm1284_vm13, 0.0, %v1268_v53  ;;  %vm1316_vm4 = vmand %vm1312_vm1, %vm1314_vm12 }
 0x22c   : > { %vm2962_vm0 = vmand %vm2960_vm8, %vm2961_vm14 }
 0x22d   : > { %v1304_v56 = vsel %vm2962_vm0, 0.0, %v1286_v54  ;;  %vm1318_vm3 = vmxor %vm1316_vm4, %vm2949_vm11 }
 0x22e   : > { %vm1320_vm15 = vmand %vm2815_vm6, %vm1318_vm3 }
 0x22f   : > { %v1322_v32 = vsel %vm1320_vm15, 0.0, %v1304_v56  ;;  %vm1311_vm10 = vmor %vm1307_vm2, %vm1309_vm9 }
 0x230   : > { %1324 = vst [vmem:[%s544_s17] sm:$0xff] %v1322_v32 }
 0x236   : > { %v1239_v57 = vpop.permute.xlu0 %1238 }
 0x237   : > { %vm1313_vm7 = vcmp.gt.f32.partialorder %v2511_v13, %v1239_v57 }
 0x238   : > { %vm1317_vm1 = vmand %vm1313_vm7, %vm1315_vm5 }
 0x239   : > { %vm1319_vm13 = vmxor %vm1317_vm1, %vm2949_vm11 }
 0x23a   : > { %vm1321_vm12 = vmand %vm1311_vm10, %vm1319_vm13 }
 0x23b   : > { %v1323_v58 = vsel %vm1321_vm12, 0.0, %v1305_v49 }
 0x23c   : > { %1325 = vst [vmem:[%s544_s17 + $0x8] sm:$0xff] %v1323_v58 }
 0x23d   : > { %2118 = shalt.err (!%p2115_p12)
}
 0x23e   : > { %1854 = dma.vmem_to_hbm [thread:$0]  (%p2279_p5), %s1462_s25, 256, %s1464_s11, %s1352_s26, %s2186_s2, %s2186_s2, %s2187_s13  }
 0x23f PF: > { %s1478_s15 = sand.u32 1, %s2161_s27   ;;  %p1862_p13 = pnand %p1760_p10, %p2292_p9 }
 0x240   : > { %s1479_s24 = scalar_lea.sflag [#allocation6], %s1478_s15 }
 0x241   : > { %p1863_p0 = pneg %p1862_p13 }
 0x243   : > { %2144 = dma.done.wait (%p1863_p0), %s1479_s24, 1024  }
 0x244   : > { %2146 = vsyncadd (%p1863_p0), %s1479_s24, 4294966272  ;;  %s2963_s22 = sadd.s32 4294967294, %s2181_s10  }
 0x245   : > { %s1488_s1 = sand.u32 1, %s2963_s22  }
 0x246   : > { %s1489_s16 = scalar_lea.sflag [#allocation8], %s1488_s1 }
 0x247   : > { %2148 = dma.done.wait (%p1863_p0), %s1489_s16, 512  }
 0x248   : > { %2150 = vsyncadd (%p1863_p0), %s1489_s16, 4294966784  ;;  %s1509_s20 = scalar_lea.sflag [#allocation11], %s1488_s1 }
 0x249   : > { %2152 = dma.done.wait (%p1863_p0), %s1509_s20, 512  }
 0x24a   : > { %2154 = vsyncadd (%p1863_p0), %s1509_s20, 4294966784  ;;  %s1529_s2 = scalar_lea.sflag [#allocation14], %s1478_s15 }
 0x24b   : > { %2156 = dma.done.wait (%p1863_p0), %s1529_s2, 256  }
 0x24c   : > { %2158 = vsyncadd (%p1863_p0), %s1529_s2, 4294967040  ;;  %s31_s10 = sadd.s32 1, %s2181_s10   ;;  %s2964_s27 = sld [smem:[#allocation19_spill]] }
 0x24d   : > { %p28_p5 = scmp.ge.s32.totalorder %s31_s10, 4   ;;  %s2965_s28 = sld [smem:[#allocation20_spill]] }
 0x24e   : > { %s2966_s29 = sld [smem:[#allocation23_spill]] }
 0x24f   : > { %s2967_s30 = sld [smem:[#allocation21_spill]]  ;;  %30 = sbr.rel (!%p28_p5) target bundleno = 14 (0xe), region = 252 }
 0x250   : > { %s2968_s9 = sld [smem:[#allocation22_spill]] }
 0x254   :  { %1535 = vsyncpa [#allocation6], 1 }
 0x255   :  { %1537 = vsyncpa [#allocation6 + $0x1], 1 }
 0x256   :  { %1538 = vsyncpa [#allocation8], 1 }
 0x257   :  { %1540 = vsyncpa [#allocation8 + $0x1], 1 }
 0x258   :  { %1541 = vsyncpa [#allocation11], 1 }
 0x259   :  { %1543 = vsyncpa [#allocation11 + $0x1], 1 }
 0x25a   :  { %1544 = vsyncpa [#allocation14], 1 }
 0x25b   :  { %1546 = vsyncpa [#allocation14 + $0x1], 1 }

</bundles_post_ra>
